<compile_context>
chip_gen: v7x
topology: tpu7x:2x2x1
jax: 0.10.0
libtpu: 0.0.40
codegen_flags: <defaults>
</compile_context>

<pallas_src>
import math

import jax
import jax.numpy as jnp
from jax import lax
from jax.experimental import pallas as pl
from jax.experimental.pallas import tpu as pltpu  # noqa: F401  (TPU backend)
import numpy as np

LN_EPS = 1e-5


def _layer_norm(t, w):
    # LayerNorm with weight, no bias (bias=False in the module).
    mu = jnp.mean(t, axis=-1, keepdims=True)
    var = jnp.mean((t - mu) ** 2, axis=-1, keepdims=True)
    return (t - mu) * lax.rsqrt(var + LN_EPS) * w


def _encoder_kernel(x_ref, pos_ref, ln1w_ref, wqkvt_ref, wot_ref,
                    ln2w_ref, w1t_ref, w2t_ref,
                    expand_ref, headmask_ref, bias_ref, summat_ref, o_ref):
    D = x_ref.shape[1]

    x = x_ref[...].astype(jnp.float32) + pos_ref[...]                 # (B*S, D)

    # ---- self-attention block (pre-norm) ----
    xn = _layer_norm(x, ln1w_ref[...])
    qkv = jnp.dot(xn, wqkvt_ref[...], preferred_element_type=jnp.float32)
    q = qkv[:, :D]           # Q columns pre-scaled by 1/sqrt(head_dim) on host
    k = qkv[:, D:2 * D]
    v = qkv[:, 2 * D:]

    # Block-diagonal head trick: row r = (batch b, head h, query i).
    #   q_bd[r, :]   = q[b*S+i, :] masked to head-h columns
    #   s[r, c]      = per-head score vs key (b', j) with c = b'*S+j
    #   bias masks both causal (j > i) and cross-batch (b' != b) entries.
    q_bd = jnp.dot(expand_ref[...], q,
                   preferred_element_type=jnp.float32) * headmask_ref[...]
    s = lax.dot_general(q_bd, k, (((1,), (1,)), ((), ())),
                        preferred_element_type=jnp.float32)        # (B*H*S, B*S)
    s = s + bias_ref[...]
    m = jnp.max(s, axis=-1, keepdims=True)
    p = jnp.exp(s - m)
    inv = pl.reciprocal(jnp.sum(p, axis=-1, keepdims=True), approx=False)
    a = p * inv                                                     # softmax
    ctx_bd = jnp.dot(a, v, preferred_element_type=jnp.float32)      # (B*H*S, D)
    # Keep each row-block's own head columns, then sum the H blocks per batch
    # with one small matmul (summat = expand^T) -> (B*S, D).
    ctx = jnp.dot(summat_ref[...], ctx_bd * headmask_ref[...],
                  preferred_element_type=jnp.float32)
    x = x + jnp.dot(ctx, wot_ref[...], preferred_element_type=jnp.float32)

    # ---- feed-forward block (pre-norm), ReLU activation ----
    xn2 = _layer_norm(x, ln2w_ref[...])
    h1 = jnp.maximum(
        jnp.dot(xn2, w1t_ref[...], preferred_element_type=jnp.float32), 0.0)
    x = x + jnp.dot(h1, w2t_ref[...], preferred_element_type=jnp.float32)

    o_ref[...] = x.astype(o_ref.dtype)


def prepare_params(params, *, batch, num_heads=8):
    """One-time host-side prep: transposed/scaled weights + attention helpers."""
    D = params["wqkv"].shape[1]
    S = params["pos"].shape[1]
    B, H = batch, num_heads
    hd = D // H
    BS, BHS = B * S, B * H * S

    wqkv_t = params["wqkv"].T.astype(jnp.float32)                # (D, 3D)
    wqkv_t = wqkv_t.at[:, :D].multiply(1.0 / math.sqrt(hd))      # fold Q scale
    wo_t = params["wo"].T.astype(jnp.float32)                    # (D, D)
    w1_t = params["w1"].T.astype(jnp.float32)                    # (D, Dff)
    w2_t = params["w2"].T.astype(jnp.float32)                    # (Dff, D)
    pos2d = jnp.tile(params["pos"].astype(jnp.float32).reshape(S, D), (B, 1))

    # Row r = (b, h, i) of the block-diagonal slab; column c = (b', j).
    r = np.arange(BHS)
    b_r, h_r, i_r = r // (H * S), (r // S) % H, r % S
    c = np.arange(BS)
    b_c, j_c = c // S, c % S
    same_batch = b_r[:, None] == b_c[None, :]
    expand = (same_batch & (i_r[:, None] == j_c[None, :])).astype(np.float32)
    bias = np.where(same_batch & (j_c[None, :] <= i_r[:, None]),
                    0.0, -1e30).astype(np.float32)
    headmask = (np.arange(D)[None, :] // hd == h_r[:, None]).astype(np.float32)

    return {
        "pos2d": pos2d,
        "ln1_w": params["ln1_w"].astype(jnp.float32),
        "wqkv_t": wqkv_t, "wo_t": wo_t,
        "ln2_w": params["ln2_w"].astype(jnp.float32),
        "w1_t": w1_t, "w2_t": w2_t,
        "expand": jnp.asarray(expand),                 # (BHS, BS)
        "headmask": jnp.asarray(headmask),             # (BHS, D)
        "bias": jnp.asarray(bias),                     # (BHS, BS)
        "summat": jnp.asarray(expand.T.copy()),        # (BS, BHS)
    }


@jax.jit
def sequence_processor(x, prep):
    """x: (B, S, D) with S = 2*seq_len - 1; prep: output of prepare_params."""
    B, S, D = x.shape
    BS = B * S
    BHS = prep["expand"].shape[0]
    Dff = prep["w1_t"].shape[1]
    x2d = x.reshape(BS, D)

    def full(shape):
        return pl.BlockSpec(shape, lambda i, _s=shape: (0,) * len(_s))

    out2d = pl.pallas_call(
        _encoder_kernel,
        out_shape=jax.ShapeDtypeStruct((BS, D), x.dtype),
        grid=(1,),
        in_specs=[
            full((BS, D)),          # x (batch folded)
            full((BS, D)),          # pos embedding (pre-tiled over batch)
            full((1, D)),           # ln1 weight
            full((D, 3 * D)),       # wqkv^T (Q columns pre-scaled)
            full((D, D)),           # out_proj^T
            full((1, D)),           # ln2 weight
            full((D, Dff)),         # linear1^T
            full((Dff, D)),         # linear2^T
            full((BHS, BS)),        # expand matrix (row-block replication)
            full((BHS, D)),         # per-(batch,head) column mask
            full((BHS, BS)),        # causal + cross-batch additive bias
            full((BS, BHS)),        # head-sum matrix (= expand^T)
        ],
        out_specs=full((BS, D)),
    )(x2d, prep["pos2d"], prep["ln1_w"], prep["wqkv_t"], prep["wo_t"],
      prep["ln2_w"], prep["w1_t"], prep["w2_t"],
      prep["expand"], prep["headmask"], prep["bias"], prep["summat"])
    return out2d.reshape(B, S, D)


# ------------------------- pure-JAX reference -------------------------------
def reference(x, params, *, num_heads=8):
    B, S, D = x.shape
    hd = D // num_heads
    x = x + params["pos"]
    xn = _layer_norm(x, params["ln1_w"][0])
    qkv = jnp.einsum("bsd,ed->bse", xn, params["wqkv"])
    q, k, v = qkv[..., :D], qkv[..., D:2 * D], qkv[..., 2 * D:]
    q = q.reshape(B, S, num_heads, hd).transpose(0, 2, 1, 3) / math.sqrt(hd)
    k = k.reshape(B, S, num_heads, hd).transpose(0, 2, 1, 3)
    v = v.reshape(B, S, num_heads, hd).transpose(0, 2, 1, 3)
    s = jnp.einsum("bhqd,bhkd->bhqk", q, k)
    mask = jnp.tril(jnp.ones((S, S), bool))
    s = jnp.where(mask, s, -jnp.inf)
    a = jax.nn.softmax(s, axis=-1)
    ctx = jnp.einsum("bhqk,bhkd->bhqd", a, v)
    ctx = ctx.transpose(0, 2, 1, 3).reshape(B, S, D)
    attn_out = jnp.einsum("bsd,ed->bse", ctx, params["wo"])
    x = x + attn_out
    xn2 = _layer_norm(x, params["ln2_w"][0])
    h1 = jax.nn.relu(jnp.einsum("bsd,fd->bsf", xn2, params["w1"]))
    ff = jnp.einsum("bsf,df->bsd", h1, params["w2"])
    return x + ff


if __name__ == "__main__":
    seq_len = 8
    hidden_dim = 32
    num_heads = 8
    dff = hidden_dim * 4
    S = seq_len * 2 - 1            # pos_embedding broadcast => actual seq length
    B = 2
    # sparsity = 0.0 -> sparse_mask is None (no pruning applied)
    # TODO(synk): apply_one_shot_pruning is undefined in the source module; only
    # the sparsity==0.0 (no-op) path is implemented.

    key = jax.random.PRNGKey(0)
    ks = jax.random.split(key, 8)
    x = jax.random.normal(ks[0], (B, S, hidden_dim), jnp.float32)

    scale_w = 1.0 / math.sqrt(hidden_dim)
    params = {
        "pos":   jax.random.normal(ks[1], (1, S, hidden_dim), jnp.float32),
        "ln1_w": jnp.ones((1, hidden_dim), jnp.float32),
        "wqkv":  jax.random.normal(ks[2], (3 * hidden_dim, hidden_dim),
                                   jnp.float32) * scale_w,
        "wo":    jax.random.normal(ks[3], (hidden_dim, hidden_dim),
                                   jnp.float32) * scale_w,
        "ln2_w": jnp.ones((1, hidden_dim), jnp.float32),
        "w1":    jax.random.normal(ks[4], (dff, hidden_dim),
                                   jnp.float32) * scale_w,
        "w2":    jax.random.normal(ks[5], (hidden_dim, dff),
                                   jnp.float32) * (1.0 / math.sqrt(dff)),
    }

    prep = prepare_params(params, batch=B, num_heads=num_heads)   # one-time prep
    out = sequence_processor(x, prep)
    out = jax.block_until_ready(out)

    ref = jax.block_until_ready(reference(x, params, num_heads=num_heads))
    np.testing.assert_allclose(np.asarray(out), np.asarray(ref),
                               rtol=1e-4, atol=1e-4)
    print("KERNEL_OK")
</pallas_src>

<mosaic_0001>
module attributes {stable_mosaic.version = 11 : i64} {
  func.func @_encoder_kernel(%arg0: i32, %arg1: memref<30x32xf32, #tpu.memory_space<vmem>>, %arg2: memref<30x32xf32, #tpu.memory_space<vmem>>, %arg3: memref<1x32xf32, #tpu.memory_space<vmem>>, %arg4: memref<32x96xf32, #tpu.memory_space<vmem>>, %arg5: memref<32x32xf32, #tpu.memory_space<vmem>>, %arg6: memref<1x32xf32, #tpu.memory_space<vmem>>, %arg7: memref<32x128xf32, #tpu.memory_space<vmem>>, %arg8: memref<128x32xf32, #tpu.memory_space<vmem>>, %arg9: memref<240x30xf32, #tpu.memory_space<vmem>>, %arg10: memref<240x32xf32, #tpu.memory_space<vmem>>, %arg11: memref<240x30xf32, #tpu.memory_space<vmem>>, %arg12: memref<30x240xf32, #tpu.memory_space<vmem>>, %arg13: memref<30x32xf32, #tpu.memory_space<vmem>>) attributes {dimension_semantics = [#tpu.dimension_semantics<arbitrary>], iteration_bounds = array<i64: 1>, scalar_prefetch = 0 : i64, scratch_operands = 0 : i64, tpu.core_type = #tpu.core_type<tc>, window_params = [{pipeline_mode = #tpu.pipeline_mode<synchronous>, transform_indices = @transform_0, window_bounds = array<i64: 30, 32>}, {pipeline_mode = #tpu.pipeline_mode<synchronous>, transform_indices = @transform_1, window_bounds = array<i64: 30, 32>}, {pipeline_mode = #tpu.pipeline_mode<synchronous>, transform_indices = @transform_2, window_bounds = array<i64: 1, 32>}, {pipeline_mode = #tpu.pipeline_mode<synchronous>, transform_indices = @transform_3, window_bounds = array<i64: 32, 96>}, {pipeline_mode = #tpu.pipeline_mode<synchronous>, transform_indices = @transform_4, window_bounds = array<i64: 32, 32>}, {pipeline_mode = #tpu.pipeline_mode<synchronous>, transform_indices = @transform_5, window_bounds = array<i64: 1, 32>}, {pipeline_mode = #tpu.pipeline_mode<synchronous>, transform_indices = @transform_6, window_bounds = array<i64: 32, 128>}, {pipeline_mode = #tpu.pipeline_mode<synchronous>, transform_indices = @transform_7, window_bounds = array<i64: 128, 32>}, {pipeline_mode = #tpu.pipeline_mode<synchronous>, transform_indices = @transform_8, window_bounds = array<i64: 240, 30>}, {pipeline_mode = #tpu.pipeline_mode<synchronous>, transform_indices = @transform_9, window_bounds = array<i64: 240, 32>}, {pipeline_mode = #tpu.pipeline_mode<synchronous>, transform_indices = @transform_10, window_bounds = array<i64: 240, 30>}, {pipeline_mode = #tpu.pipeline_mode<synchronous>, transform_indices = @transform_11, window_bounds = array<i64: 30, 240>}, {pipeline_mode = #tpu.pipeline_mode<synchronous>, transform_indices = @transform_12, window_bounds = array<i64: 30, 32>}]} {
    %c0 = arith.constant 0 : index
    %c0_0 = arith.constant 0 : index
    %0 = vector.load %arg1[%c0, %c0_0] : memref<30x32xf32, #tpu.memory_space<vmem>>, vector<30x32xf32>
    %c0_1 = arith.constant 0 : index
    %c0_2 = arith.constant 0 : index
    %1 = vector.load %arg2[%c0_1, %c0_2] : memref<30x32xf32, #tpu.memory_space<vmem>>, vector<30x32xf32>
    %2 = arith.addf %0, %1 : vector<30x32xf32>
    %c0_3 = arith.constant 0 : index
    %c0_4 = arith.constant 0 : index
    %3 = vector.load %arg3[%c0_3, %c0_4] : memref<1x32xf32, #tpu.memory_space<vmem>>, vector<1x32xf32>
    %cst = arith.constant dense<0.000000e+00> : vector<30xf32>
    %4 = vector.multi_reduction <add>, %2, %cst [1] : vector<30x32xf32> to vector<30xf32>
    %5 = vector.shape_cast %4 : vector<30xf32> to vector<30x1xf32>
    %cst_5 = arith.constant 3.200000e+01 : f32
    %6 = vector.broadcast %cst_5 : f32 to vector<30x1xf32>
    %7 = arith.divf %5, %6 : vector<30x1xf32>
    %8 = vector.broadcast %7 : vector<30x1xf32> to vector<30x32xf32>
    %9 = arith.subf %2, %8 : vector<30x32xf32>
    %10 = arith.mulf %9, %9 : vector<30x32xf32>
    %cst_6 = arith.constant dense<0.000000e+00> : vector<30xf32>
    %11 = vector.multi_reduction <add>, %10, %cst_6 [1] : vector<30x32xf32> to vector<30xf32>
    %12 = vector.shape_cast %11 : vector<30xf32> to vector<30x1xf32>
    %cst_7 = arith.constant 3.200000e+01 : f32
    %13 = vector.broadcast %cst_7 : f32 to vector<30x1xf32>
    %14 = arith.divf %12, %13 : vector<30x1xf32>
    %15 = vector.broadcast %7 : vector<30x1xf32> to vector<30x32xf32>
    %16 = arith.subf %2, %15 : vector<30x32xf32>
    %cst_8 = arith.constant 9.99999974E-6 : f32
    %17 = vector.broadcast %cst_8 : f32 to vector<30x1xf32>
    %18 = arith.addf %14, %17 : vector<30x1xf32>
    %19 = math.rsqrt %18 : vector<30x1xf32>
    %20 = vector.broadcast %19 : vector<30x1xf32> to vector<30x32xf32>
    %21 = arith.mulf %16, %20 : vector<30x32xf32>
    %22 = vector.broadcast %3 : vector<1x32xf32> to vector<30x32xf32>
    %23 = arith.mulf %21, %22 : vector<30x32xf32>
    %c0_9 = arith.constant 0 : index
    %c0_10 = arith.constant 0 : index
    %24 = vector.load %arg4[%c0_9, %c0_10] : memref<32x96xf32, #tpu.memory_space<vmem>>, vector<32x96xf32>
    %cst_11 = arith.constant dense<0.000000e+00> : vector<30x96xf32>
    %25 = tpu.matmul %23, %24, %cst_11 {dimension_numbers = #tpu.dot_dimension_numbers<[1], [0], [0], [1], [0, 0, 1, 1], [], []>} : vector<30x32xf32>, vector<32x96xf32>, vector<30x96xf32> -> vector<30x96xf32>
    %26 = vector.extract_strided_slice %25 {offsets = [0, 0], sizes = [30, 32], strides = [1, 1]} : vector<30x96xf32> to vector<30x32xf32>
    %27 = vector.extract_strided_slice %25 {offsets = [0, 32], sizes = [30, 32], strides = [1, 1]} : vector<30x96xf32> to vector<30x32xf32>
    %28 = vector.extract_strided_slice %25 {offsets = [0, 64], sizes = [30, 32], strides = [1, 1]} : vector<30x96xf32> to vector<30x32xf32>
    %c0_12 = arith.constant 0 : index
    %c0_13 = arith.constant 0 : index
    %29 = vector.load %arg9[%c0_12, %c0_13] : memref<240x30xf32, #tpu.memory_space<vmem>>, vector<240x30xf32>
    %cst_14 = arith.constant dense<0.000000e+00> : vector<240x32xf32>
    %30 = tpu.matmul %29, %26, %cst_14 {dimension_numbers = #tpu.dot_dimension_numbers<[1], [0], [0], [1], [0, 0, 1, 1], [], []>} : vector<240x30xf32>, vector<30x32xf32>, vector<240x32xf32> -> vector<240x32xf32>
    %c0_15 = arith.constant 0 : index
    %c0_16 = arith.constant 0 : index
    %31 = vector.load %arg10[%c0_15, %c0_16] : memref<240x32xf32, #tpu.memory_space<vmem>>, vector<240x32xf32>
    %32 = arith.mulf %30, %31 : vector<240x32xf32>
    %cst_17 = arith.constant dense<0.000000e+00> : vector<240x30xf32>
    %33 = tpu.matmul %32, %27, %cst_17 {dimension_numbers = #tpu.dot_dimension_numbers<[1], [1], [0], [0], [0, 0, 1, 0], [], []>} : vector<240x32xf32>, vector<30x32xf32>, vector<240x30xf32> -> vector<240x30xf32>
    %c0_18 = arith.constant 0 : index
    %c0_19 = arith.constant 0 : index
    %34 = vector.load %arg11[%c0_18, %c0_19] : memref<240x30xf32, #tpu.memory_space<vmem>>, vector<240x30xf32>
    %35 = arith.addf %33, %34 : vector<240x30xf32>
    %cst_20 = arith.constant dense<0xFF800000> : vector<240xf32>
    %36 = vector.multi_reduction <maximumf>, %35, %cst_20 [1] : vector<240x30xf32> to vector<240xf32>
    %37 = vector.shape_cast %36 : vector<240xf32> to vector<240x1xf32>
    %38 = vector.broadcast %37 : vector<240x1xf32> to vector<240x30xf32>
    %39 = arith.subf %35, %38 : vector<240x30xf32>
    %40 = math.exp %39 : vector<240x30xf32>
    %cst_21 = arith.constant dense<0.000000e+00> : vector<240xf32>
    %41 = vector.multi_reduction <add>, %40, %cst_21 [1] : vector<240x30xf32> to vector<240xf32>
    %42 = vector.shape_cast %41 : vector<240xf32> to vector<240x1xf32>
    %43 = tpu.reciprocal %42 : vector<240x1xf32> -> vector<240x1xf32>
    %44 = vector.broadcast %43 : vector<240x1xf32> to vector<240x30xf32>
    %45 = arith.mulf %40, %44 : vector<240x30xf32>
    %cst_22 = arith.constant dense<0.000000e+00> : vector<240x32xf32>
    %46 = tpu.matmul %45, %28, %cst_22 {dimension_numbers = #tpu.dot_dimension_numbers<[1], [0], [0], [1], [0, 0, 1, 1], [], []>} : vector<240x30xf32>, vector<30x32xf32>, vector<240x32xf32> -> vector<240x32xf32>
    %c0_23 = arith.constant 0 : index
    %c0_24 = arith.constant 0 : index
    %47 = vector.load %arg12[%c0_23, %c0_24] : memref<30x240xf32, #tpu.memory_space<vmem>>, vector<30x240xf32>
    %c0_25 = arith.constant 0 : index
    %c0_26 = arith.constant 0 : index
    %48 = vector.load %arg10[%c0_25, %c0_26] : memref<240x32xf32, #tpu.memory_space<vmem>>, vector<240x32xf32>
    %49 = arith.mulf %46, %48 : vector<240x32xf32>
    %cst_27 = arith.constant dense<0.000000e+00> : vector<30x32xf32>
    %50 = tpu.matmul %47, %49, %cst_27 {dimension_numbers = #tpu.dot_dimension_numbers<[1], [0], [0], [1], [0, 0, 1, 1], [], []>} : vector<30x240xf32>, vector<240x32xf32>, vector<30x32xf32> -> vector<30x32xf32>
    %c0_28 = arith.constant 0 : index
    %c0_29 = arith.constant 0 : index
    %51 = vector.load %arg5[%c0_28, %c0_29] : memref<32x32xf32, #tpu.memory_space<vmem>>, vector<32x32xf32>
    %cst_30 = arith.constant dense<0.000000e+00> : vector<30x32xf32>
    %52 = tpu.matmul %50, %51, %cst_30 {dimension_numbers = #tpu.dot_dimension_numbers<[1], [0], [0], [1], [0, 0, 1, 1], [], []>} : vector<30x32xf32>, vector<32x32xf32>, vector<30x32xf32> -> vector<30x32xf32>
    %53 = arith.addf %2, %52 : vector<30x32xf32>
    %c0_31 = arith.constant 0 : index
    %c0_32 = arith.constant 0 : index
    %54 = vector.load %arg6[%c0_31, %c0_32] : memref<1x32xf32, #tpu.memory_space<vmem>>, vector<1x32xf32>
    %cst_33 = arith.constant dense<0.000000e+00> : vector<30xf32>
    %55 = vector.multi_reduction <add>, %53, %cst_33 [1] : vector<30x32xf32> to vector<30xf32>
    %56 = vector.shape_cast %55 : vector<30xf32> to vector<30x1xf32>
    %cst_34 = arith.constant 3.200000e+01 : f32
    %57 = vector.broadcast %cst_34 : f32 to vector<30x1xf32>
    %58 = arith.divf %56, %57 : vector<30x1xf32>
    %59 = vector.broadcast %58 : vector<30x1xf32> to vector<30x32xf32>
    %60 = arith.subf %53, %59 : vector<30x32xf32>
    %61 = arith.mulf %60, %60 : vector<30x32xf32>
    %cst_35 = arith.constant dense<0.000000e+00> : vector<30xf32>
    %62 = vector.multi_reduction <add>, %61, %cst_35 [1] : vector<30x32xf32> to vector<30xf32>
    %63 = vector.shape_cast %62 : vector<30xf32> to vector<30x1xf32>
    %cst_36 = arith.constant 3.200000e+01 : f32
    %64 = vector.broadcast %cst_36 : f32 to vector<30x1xf32>
    %65 = arith.divf %63, %64 : vector<30x1xf32>
    %66 = vector.broadcast %58 : vector<30x1xf32> to vector<30x32xf32>
    %67 = arith.subf %53, %66 : vector<30x32xf32>
    %cst_37 = arith.constant 9.99999974E-6 : f32
    %68 = vector.broadcast %cst_37 : f32 to vector<30x1xf32>
    %69 = arith.addf %65, %68 : vector<30x1xf32>
    %70 = math.rsqrt %69 : vector<30x1xf32>
    %71 = vector.broadcast %70 : vector<30x1xf32> to vector<30x32xf32>
    %72 = arith.mulf %67, %71 : vector<30x32xf32>
    %73 = vector.broadcast %54 : vector<1x32xf32> to vector<30x32xf32>
    %74 = arith.mulf %72, %73 : vector<30x32xf32>
    %c0_38 = arith.constant 0 : index
    %c0_39 = arith.constant 0 : index
    %75 = vector.load %arg7[%c0_38, %c0_39] : memref<32x128xf32, #tpu.memory_space<vmem>>, vector<32x128xf32>
    %cst_40 = arith.constant dense<0.000000e+00> : vector<30x128xf32>
    %76 = tpu.matmul %74, %75, %cst_40 {dimension_numbers = #tpu.dot_dimension_numbers<[1], [0], [0], [1], [0, 0, 1, 1], [], []>} : vector<30x32xf32>, vector<32x128xf32>, vector<30x128xf32> -> vector<30x128xf32>
    %cst_41 = arith.constant 0.000000e+00 : f32
    %77 = vector.broadcast %cst_41 : f32 to vector<30x128xf32>
    %78 = arith.maximumf %76, %77 : vector<30x128xf32>
    %c0_42 = arith.constant 0 : index
    %c0_43 = arith.constant 0 : index
    %79 = vector.load %arg8[%c0_42, %c0_43] : memref<128x32xf32, #tpu.memory_space<vmem>>, vector<128x32xf32>
    %cst_44 = arith.constant dense<0.000000e+00> : vector<30x32xf32>
    %80 = tpu.matmul %78, %79, %cst_44 {dimension_numbers = #tpu.dot_dimension_numbers<[1], [0], [0], [1], [0, 0, 1, 1], [], []>} : vector<30x128xf32>, vector<128x32xf32>, vector<30x32xf32> -> vector<30x32xf32>
    %81 = arith.addf %53, %80 : vector<30x32xf32>
    %c0_45 = arith.constant 0 : index
    %c0_46 = arith.constant 0 : index
    %82 = vector.load %arg13[%c0_45, %c0_46] : memref<30x32xf32, #tpu.memory_space<vmem>>, vector<30x32xf32>
    tpu.vector_store %arg13[%c0_45, %c0_46], %81 {strides = array<i32>} : memref<30x32xf32, #tpu.memory_space<vmem>>, vector<30x32xf32>,
    return
  }
  func.func @transform_0(%arg0: i32) -> (i32, i32) {
    %c0_i32 = arith.constant 0 : i32
    %c0_i32_0 = arith.constant 0 : i32
    %c0_i32_1 = arith.constant 0 : i32
    return %c0_i32, %c0_i32_0 : i32, i32
  }
  func.func @transform_1(%arg0: i32) -> (i32, i32) {
    %c0_i32 = arith.constant 0 : i32
    %c0_i32_0 = arith.constant 0 : i32
    %c0_i32_1 = arith.constant 0 : i32
    return %c0_i32, %c0_i32_0 : i32, i32
  }
  func.func @transform_2(%arg0: i32) -> (i32, i32) {
    %c0_i32 = arith.constant 0 : i32
    %c0_i32_0 = arith.constant 0 : i32
    %c0_i32_1 = arith.constant 0 : i32
    return %c0_i32, %c0_i32_0 : i32, i32
  }
  func.func @transform_3(%arg0: i32) -> (i32, i32) {
    %c0_i32 = arith.constant 0 : i32
    %c0_i32_0 = arith.constant 0 : i32
    %c0_i32_1 = arith.constant 0 : i32
    return %c0_i32, %c0_i32_0 : i32, i32
  }
  func.func @transform_4(%arg0: i32) -> (i32, i32) {
    %c0_i32 = arith.constant 0 : i32
    %c0_i32_0 = arith.constant 0 : i32
    %c0_i32_1 = arith.constant 0 : i32
    return %c0_i32, %c0_i32_0 : i32, i32
  }
  func.func @transform_5(%arg0: i32) -> (i32, i32) {
    %c0_i32 = arith.constant 0 : i32
    %c0_i32_0 = arith.constant 0 : i32
    %c0_i32_1 = arith.constant 0 : i32
    return %c0_i32, %c0_i32_0 : i32, i32
  }
  func.func @transform_6(%arg0: i32) -> (i32, i32) {
    %c0_i32 = arith.constant 0 : i32
    %c0_i32_0 = arith.constant 0 : i32
    %c0_i32_1 = arith.constant 0 : i32
    return %c0_i32, %c0_i32_0 : i32, i32
  }
  func.func @transform_7(%arg0: i32) -> (i32, i32) {
    %c0_i32 = arith.constant 0 : i32
    %c0_i32_0 = arith.constant 0 : i32
    %c0_i32_1 = arith.constant 0 : i32
    return %c0_i32, %c0_i32_0 : i32, i32
  }
  func.func @transform_8(%arg0: i32) -> (i32, i32) {
    %c0_i32 = arith.constant 0 : i32
    %c0_i32_0 = arith.constant 0 : i32
    %c0_i32_1 = arith.constant 0 : i32
    return %c0_i32, %c0_i32_0 : i32, i32
  }
  func.func @transform_9(%arg0: i32) -> (i32, i32) {
    %c0_i32 = arith.constant 0 : i32
    %c0_i32_0 = arith.constant 0 : i32
    %c0_i32_1 = arith.constant 0 : i32
    return %c0_i32, %c0_i32_0 : i32, i32
  }
  func.func @transform_10(%arg0: i32) -> (i32, i32) {
    %c0_i32 = arith.constant 0 : i32
    %c0_i32_0 = arith.constant 0 : i32
    %c0_i32_1 = arith.constant 0 : i32
    return %c0_i32, %c0_i32_0 : i32, i32
  }
  func.func @transform_11(%arg0: i32) -> (i32, i32) {
    %c0_i32 = arith.constant 0 : i32
    %c0_i32_0 = arith.constant 0 : i32
    %c0_i32_1 = arith.constant 0 : i32
    return %c0_i32, %c0_i32_0 : i32, i32
  }
  func.func @transform_12(%arg0: i32) -> (i32, i32) {
    %c0_i32 = arith.constant 0 : i32
    %c0_i32_0 = arith.constant 0 : i32
    %c0_i32_1 = arith.constant 0 : i32
    return %c0_i32, %c0_i32_0 : i32, i32
  }
}

</mosaic_0001>

<bundles_post_ra>
// kernel: sequence_processor.1
= control target key start
LH: loop header
LB: loop body
LE: loop exit
PB: predicated region body
PF: predicated region fallthrough
CT: control target
= control target key end

     0   :  { %vm54_vm0 = vcmask 261120   ;;  %vm64_vm1 = vcmask 259072   ;;  %vm250_vm2 = vcmask 244736   ;;  %vm341_vm3 = vcmask 1045504   ;;  %s2966_s27 = smov 96   ;;  %s4073_s0 = inlined_call_operand.vmem [shape: f32[30,32], index: 0, kind: input, shape index: {}]   ;;  %s4074_s1 = inlined_call_operand.vmem [shape: f32[30,32], index: 1, kind: input, shape index: {}]   ;;  %s4075_s3 = inlined_call_operand.vmem [shape: f32[32,96], index: 3, kind: input, shape index: {}]   ;;  %s4076_s2 = inlined_call_operand.vmem [shape: f32[1,32], index: 2, kind: input, shape index: {}]   ;;  %s4077_s8 = inlined_call_operand.vmem [shape: f32[240,30], index: 8, kind: input, shape index: {}]   ;;  %s4078_s9 = inlined_call_operand.vmem [shape: f32[240,32], index: 9, kind: input, shape index: {}]   ;;  %s4079_s10 = inlined_call_operand.vmem [shape: f32[240,30], index: 10, kind: input, shape index: {}]   ;;  %s4080_s11 = inlined_call_operand.vmem [shape: f32[30,240], index: 11, kind: input, shape index: {}]   ;;  %s4081_s4 = inlined_call_operand.vmem [shape: f32[32,32], index: 4, kind: input, shape index: {}]   ;;  %s4082_s6 = inlined_call_operand.vmem [shape: f32[32,128], index: 6, kind: input, shape index: {}]   ;;  %s4083_s7 = inlined_call_operand.vmem [shape: f32[128,32], index: 7, kind: input, shape index: {}]   ;;  %s4084_s5 = inlined_call_operand.vmem [shape: f32[1,32], index: 5, kind: input, shape index: {}]   ;;  %s4085_s12 = inlined_call_operand.vmem [shape: f32[30,32], index: 12, kind: output, shape index: {}]  }
   0x1   :  { %v41_v0 = vld [vmem:[%s4073_s0] sm:$0xff]  ;;  %v43_v2 = vld [vmem:[%s4073_s0 + $0x10] sm:$0xff]  ;;  %v42_v5 = vld [vmem:[%s4073_s0 + $0x8] sm:$0xff]  ;;  %vm2967_vm4 = vmmov 1   ;;  %vm1660_vm7 = vcmask 916480  }
   0x2   :  { %v45_v1 = vld [vmem:[%s4074_s1] sm:$0xff]  ;;  %v47_v4 = vld [vmem:[%s4074_s1 + $0x10] sm:$0xff]  ;;  %v46_v6 = vld [vmem:[%s4074_s1 + $0x8] sm:$0xff] }
   0x3   :  { %v3044_v3 = vadd.f32 %v45_v1, %v41_v0  ;;  %v3055_v7 = vadd.f32 %v47_v4, %v43_v2  ;;  %v3057_v8 = vadd.f32 %v46_v6, %v42_v5  ;;  %v44_v9 = vld [vmem:[%s4073_s0 + $0x18] sm:$0x3f]  ;;  %v119_v36 = vld [vmem:[%s4075_s3] sm:$0xff]  ;;  %v120_v37 = vld [vmem:[%s4075_s3 + $0x8] sm:$0xff] }
   0x4   :  { %v48_v10 = vld [vmem:[%s4074_s1 + $0x18] sm:$0x3f]  ;;  %v121_v38 = vld [vmem:[%s4075_s3 + $0x10] sm:$0xff]  ;;  %v2643_v39 = vpack.c.bf16 %v120_v37, %v119_v36  ;;  %v2144_v55 = vld [vmem:[%s4076_s2] ss:$0 sm:$0xff] }
   0x5   :  { %v55_v11 = vsel %vm54_vm0, %v3044_v3, 0.0  ;;  %v3067_v12 = vadd.f32 %v48_v10, %v44_v9  ;;  %v61_v13 = vsel %vm54_vm0, %v3055_v7, 0.0  ;;  %v58_v14 = vsel %vm54_vm0, %v3057_v8, 0.0  ;;  %v122_v40 = vld [vmem:[%s4075_s3 + $0x18] sm:$0xff]  ;;  %v220_v4 = vld [vmem:[%s4077_s8] sm:$0xff]  ;;  %vm3109_vm5 = vmpackc.low %vm341_vm3, %vm2967_vm4 }
   0x6   :  { %56 = vadd.xlane.f32.xlu0 %v55_v11  ;;  %62 = vadd.xlane.f32.xlu1 %v61_v13  ;;  %v2647_v41 = vpack.c.bf16 %v122_v40, %v121_v38  ;;  %v240_v36 = vld [vmem:[%s4077_s8 + $0xa0] sm:$0xff]  ;;  %v241_v37 = vld [vmem:[%s4077_s8 + $0xa8] sm:$0xff]  ;;  %v242_v38 = vld [vmem:[%s4077_s8 + $0xb0] sm:$0xff] }
   0x7   :  { %v65_v15 = vsel %vm64_vm1, %v3067_v12, 0.0  ;;  %2644 = vmatprep.subr.bf16.mxu0 %v2643_v39  ;;  %2426 = vmatprep.mubr.msk.f32.mxu1 %vm250_vm2, %v220_v4  ;;  %v244_v40 = vld [vmem:[%s4077_s8 + $0xc0] sm:$0xff]  ;;  %vm2662_vm6 = vmpackc.low %vm54_vm0, %vm54_vm0 }
   0x8   :  { %2646 = vmatpush3.bf16.msra.mxu0 %v2643_v39  ;;  %v243_v39 = vld [vmem:[%s4077_s8 + $0xb8] sm:$0xff]  ;;  %v564_v4 = vld [vmem:[%s4078_s9 + $0x20] sm:$0xff] }
   0x9   :  { %2648 = vmatprep.subr.bf16.mxu0 %v2647_v41 }
   0xa   :  { %59 = vadd.xlane.f32.xlu0 %v58_v14  ;;  %66 = vadd.xlane.f32.xlu1 %v65_v15 }
   0xc   :  { %2650 = vmatpush3.bf16.msra.mxu0 %v2647_v41  ;;  %v245_v41 = vld [vmem:[%s4077_s8 + $0xc8] sm:$0xff] }
  0x93   :  { %v57_v16 = vpop.xlane.xlu0 %56  ;;  %v63_v18 = vpop.xlane.xlu1 %62 }
  0x94   :  { %v69_v17 = vmul.f32 0.03125, %v57_v16  ;;  %v71_v19 = vmul.f32 0.03125, %v63_v18  ;;  %v222_v18 = vld [vmem:[%s4077_s8 + $0x10] sm:$0xff] }
  0x96   :  { %v73_v20 = vsub.f32 %v3044_v3, %v69_v17  ;;  %v75_v21 = vsub.f32 %v3055_v7, %v71_v19  ;;  %v221_v17 = vld [vmem:[%s4077_s8 + $0x8] sm:$0xff]  ;;  %v223_v19 = vld [vmem:[%s4077_s8 + $0x18] sm:$0xff] }
  0x97   :  { %v60_v22 = vpop.xlane.xlu0 %59  ;;  %v67_v24 = vpop.xlane.xlu1 %66 }
  0x98   :  { %v70_v23 = vmul.f32 0.03125, %v60_v22  ;;  %v77_v25 = vmul.f32 %v73_v20, %v73_v20  ;;  %v72_v26 = vmul.f32 0.03125, %v67_v24  ;;  %v79_v27 = vmul.f32 %v75_v21, %v75_v21  ;;  %v226_v22 = vld [vmem:[%s4077_s8 + $0x30] sm:$0xff]  ;;  %v228_v24 = vld [vmem:[%s4077_s8 + $0x40] sm:$0xff] }
  0x9a   :  { %v74_v28 = vsub.f32 %v3057_v8, %v70_v23  ;;  %v81_v29 = vsel %vm54_vm0, %v77_v25, 0.0  ;;  %v76_v30 = vsub.f32 %v3067_v12, %v72_v26  ;;  %v87_v31 = vsel %vm54_vm0, %v79_v27, 0.0  ;;  %v227_v23 = vld [vmem:[%s4077_s8 + $0x38] sm:$0xff]  ;;  %v229_v25 = vld [vmem:[%s4077_s8 + $0x48] sm:$0xff]  ;;  %v230_v26 = vld [vmem:[%s4077_s8 + $0x50] sm:$0xff] }
  0x9b   :  { %82 = vadd.xlane.f32.xlu0 %v81_v29  ;;  %v231_v27 = vld [vmem:[%s4077_s8 + $0x58] sm:$0xff]  ;;  %v233_v29 = vld [vmem:[%s4077_s8 + $0x68] sm:$0xff] }
  0x9c   :  { %v78_v32 = vmul.f32 %v74_v28, %v74_v28  ;;  %v80_v33 = vmul.f32 %v76_v30, %v76_v30 }
  0x9e   :  { %v84_v34 = vsel %vm54_vm0, %v78_v32, 0.0  ;;  %v90_v35 = vsel %vm64_vm1, %v80_v33, 0.0  ;;  %v236_v32 = vld [vmem:[%s4077_s8 + $0x80] sm:$0xff]  ;;  %v237_v33 = vld [vmem:[%s4077_s8 + $0x88] sm:$0xff] }
  0x9f   :  { %88 = vadd.xlane.f32.xlu0 %v87_v31  ;;  %85 = vadd.xlane.f32.xlu1 %v84_v34  ;;  %v235_v31 = vld [vmem:[%s4077_s8 + $0x78] sm:$0xff]  ;;  %v238_v34 = vld [vmem:[%s4077_s8 + $0x90] sm:$0xff] }
  0xa3   :  { %91 = vadd.xlane.f32.xlu1 %v90_v35  ;;  %v239_v35 = vld [vmem:[%s4077_s8 + $0x98] sm:$0xff] }
 0x128   :  { %v83_v42 = vpop.xlane.xlu0 %82 }
 0x129   :  { %v93_v43 = vmul.f32 0.03125, %v83_v42  ;;  %v246_v42 = vld [vmem:[%s4077_s8 + $0xd0] sm:$0xff] }
 0x12b   :  { %v97_v44 = vadd.f32 1e-05, %v93_v43  ;;  %v247_v43 = vld [vmem:[%s4077_s8 + $0xd8] sm:$0xff] }
 0x12c   :  { %v86_v45 = vpop.xlane.xlu1 %85  ;;  %v89_v46 = vpop.xlane.xlu0 %88 }
 0x12d   :  { %2800 = vrsqrt.f32 %v97_v44  ;;  %v94_v47 = vmul.f32 0.03125, %v86_v45  ;;  %v95_v48 = vmul.f32 0.03125, %v89_v46  ;;  %v248_v44 = vld [vmem:[%s4077_s8 + $0xe0] sm:$0xff]  ;;  %v249_v45 = vld [vmem:[%s4077_s8 + $0xe8] sm:$0xff] }
 0x12f   :  { %v98_v49 = vadd.f32 1e-05, %v94_v47  ;;  %v99_v50 = vadd.f32 1e-05, %v95_v48 }
 0x130   :  { %v92_v51 = vpop.xlane.xlu1 %91 }
 0x131   :  { %2802 = vrsqrt.f32 %v98_v49  ;;  %v96_v52 = vmul.f32 0.03125, %v92_v51 }
 0x132   :  { %2804 = vrsqrt.f32 %v99_v50 }
 0x133   :  { %v100_v53 = vadd.f32 1e-05, %v96_v52 }
 0x135   :  { %2806 = vrsqrt.f32 %v100_v53 }
 0x137   :  { %v2801_v54 = vpop.eup %2800 }
 0x138   :  { %v105_v56 = vmul.f32 %v2801_v54, %v73_v20  ;;  %v224_v20 = vld [vmem:[%s4077_s8 + $0x20] sm:$0xff] }
 0x139   :  { %v560_v54 = vld [vmem:[%s4078_s9] sm:$0xff] }
 0x13a   :  { %v115_v57 = vmul.f32 %v2144_v55, %v105_v56  ;;  %v561_v56 = vld [vmem:[%s4078_s9 + $0x8] sm:$0xff] }
 0x13b   :  { %v2803_v58 = vpop.eup %2802 }
 0x13c   :  { %v2805_v59 = vpop.eup %2804  ;;  %2412 = vmatprep.mubr.msk.f32.mxu0 %vm54_vm0, %v115_v57  ;;  %v106_v60 = vmul.f32 %v2803_v58, %v74_v28  ;;  %v232_v28 = vld [vmem:[%s4077_s8 + $0x60] sm:$0xff] }
 0x13d   :  { %v107_v61 = vmul.f32 %v2805_v59, %v75_v21  ;;  %v225_v21 = vld [vmem:[%s4077_s8 + $0x28] sm:$0xff]  ;;  %v563_v59 = vld [vmem:[%s4078_s9 + $0x18] sm:$0xff] }
 0x13e   :  { %v116_v62 = vmul.f32 %v2144_v55, %v106_v60 }
 0x13f   :  { %v2807_v63 = vpop.eup %2806  ;;  %v117_v0 = vmul.f32 %v2144_v55, %v107_v61  ;;  %v562_v61 = vld [vmem:[%s4078_s9 + $0x10] sm:$0xff] }
 0x140   :  { %2413 = vmatmul.mubr.msk.f32.vlgmr.msra.gmra.mrb[0].mxu0 %vm54_vm0, %v116_v62  ;;  %v108_v1 = vmul.f32 %v2807_v63, %v76_v30  ;;  %v234_v30 = vld [vmem:[%s4077_s8 + $0x70] sm:$0xff] }
 0x141   :  { %2415 = vmatprep.mubr.msk.f32.mxu0 %vm54_vm0, %v117_v0 }
 0x142   :  { %v118_v2 = vmul.f32 %v2144_v55, %v108_v1 }
 0x144   :  { %2416 = vmatmul.mubr.msk.f32.gmra.mrb[2].mxu0 %vm54_vm0, %v118_v2  ;;  %v565_v2 = vld [vmem:[%s4078_s9 + $0x28] sm:$0xff] }
 0x213   :  { %v2414_v5 = vpop.f32.mrb[0].mxu0 }
 0x214   :  { %v201_v6 = vpop.f32.mrb[1].mxu0 }
 0x215   :  { %v3106_v9 = vpack.i.bf16 %v2414_v5, %v201_v6  ;;  %v2651_v10 = vpack.c.bf16 %v2414_v5, %v201_v6 }
 0x217   :  { %2781 = vrot.lane.b32.xlu0 %v3106_v9, %s2966_s27  ;;  %v2417_v11 = vpop.f32.mrb[2].mxu0  ;;  %2652 = vmatprep.subr.bf16.mxu1 %v2651_v10 }
 0x218   :  { %v211_v13 = vpop.f32.mrb[3].mxu0  ;;  %2654 = vmatpush3.bf16.msra.mxu1 %v2651_v10 }
 0x219   :  { %v3113_v15 = vpack.i.bf16 %v2417_v11, %v211_v13  ;;  %v2655_v16 = vpack.c.bf16 %v2417_v11, %v211_v13  ;;  %v567_v13 = vld [vmem:[%s4078_s9 + $0x38] sm:$0xff] }
 0x21b   :  { %2786 = vrot.lane.b32.xlu1 %v3113_v15, %s2966_s27  ;;  %2657 = vmatprep.subr.msk.bf16.mxu1 %vm3109_vm5, %v2655_v16 }
 0x21c   :  { %2660 = vmatpush3.bf16.msk.msra.mxu1 %vm3109_vm5, %v2655_v16  ;;  %v566_v16 = vld [vmem:[%s4078_s9 + $0x30] sm:$0xff] }
 0x21f   :  { %2427 = vmatmul.mubr.msk.f32.vlgmr.msra.gmra.mrb[0].mxu1 %vm250_vm2, %v221_v17 }
 0x220   :  { %2429 = vmatprep.mubr.msk.f32.mxu1 %vm250_vm2, %v222_v18 }
 0x223   :  { %2430 = vmatmul.mubr.msk.f32.gmra.mrb[2].mxu1 %vm250_vm2, %v223_v19 }
 0x224   :  { %2432 = vmatprep.mubr.msk.f32.mxu1 %vm250_vm2, %v224_v20 }
 0x227   :  { %2433 = vmatmul.mubr.msk.f32.gmra.mrb[4].mxu1 %vm250_vm2, %v225_v21  ;;  %v569_v21 = vld [vmem:[%s4078_s9 + $0x48] sm:$0xff] }
 0x228   :  { %2435 = vmatprep.mubr.msk.f32.mxu1 %vm250_vm2, %v226_v22  ;;  %v568_v22 = vld [vmem:[%s4078_s9 + $0x40] sm:$0xff] }
 0x22b   :  { %2436 = vmatmul.mubr.msk.f32.gmra.mrb[6].mxu1 %vm250_vm2, %v227_v23 }
 0x22c   :  { %2438 = vmatprep.mubr.msk.f32.mxu1 %vm250_vm2, %v228_v24 }
 0x22f   :  { %2439 = vmatmul.mubr.msk.f32.gmra.mrb[8].mxu1 %vm250_vm2, %v229_v25 }
 0x230   :  { %2441 = vmatprep.mubr.msk.f32.mxu1 %vm250_vm2, %v230_v26 }
 0x233   :  { %2442 = vmatmul.mubr.msk.f32.gmra.mrb[10].mxu1 %vm250_vm2, %v231_v27  ;;  %v571_v27 = vld [vmem:[%s4078_s9 + $0x58] sm:$0xff] }
 0x234   :  { %2444 = vmatprep.mubr.msk.f32.mxu1 %vm250_vm2, %v232_v28  ;;  %v570_v28 = vld [vmem:[%s4078_s9 + $0x50] sm:$0xff] }
 0x237   :  { %2445 = vmatmul.mubr.msk.f32.gmra.mrb[12].mxu1 %vm250_vm2, %v233_v29 }
 0x238   :  { %2447 = vmatprep.mubr.msk.f32.mxu1 %vm250_vm2, %v234_v30 }
 0x23b   :  { %2448 = vmatmul.mubr.msk.f32.gmra.mrb[14].mxu1 %vm250_vm2, %v235_v31 }
 0x23c   :  { %2450 = vmatprep.mubr.msk.f32.mxu1 %vm250_vm2, %v236_v32 }
 0x23f   :  { %2451 = vmatmul.mubr.msk.f32.gmra.mrb[16].mxu1 %vm250_vm2, %v237_v33  ;;  %v573_v33 = vld [vmem:[%s4078_s9 + $0x68] sm:$0xff] }
 0x240   :  { %2453 = vmatprep.mubr.msk.f32.mxu1 %vm250_vm2, %v238_v34  ;;  %v572_v34 = vld [vmem:[%s4078_s9 + $0x60] sm:$0xff] }
 0x243   :  { %2454 = vmatmul.mubr.msk.f32.gmra.mrb[18].mxu1 %vm250_vm2, %v239_v35 }
 0x244   :  { %2456 = vmatprep.mubr.msk.f32.mxu1 %vm250_vm2, %v240_v36 }
 0x247   :  { %2457 = vmatmul.mubr.msk.f32.gmra.mrb[20].mxu1 %vm250_vm2, %v241_v37 }
 0x248   :  { %2459 = vmatprep.mubr.msk.f32.mxu1 %vm250_vm2, %v242_v38 }
 0x24b   :  { %2460 = vmatmul.mubr.msk.f32.gmra.mrb[22].mxu1 %vm250_vm2, %v243_v39  ;;  %v575_v39 = vld [vmem:[%s4078_s9 + $0x78] sm:$0xff] }
 0x24c   :  { %2462 = vmatprep.mubr.msk.f32.mxu1 %vm250_vm2, %v244_v40  ;;  %v574_v40 = vld [vmem:[%s4078_s9 + $0x70] sm:$0xff] }
 0x24f   :  { %2463 = vmatmul.mubr.msk.f32.gmra.mrb[24].mxu1 %vm250_vm2, %v245_v41 }
 0x250   :  { %2465 = vmatprep.mubr.msk.f32.mxu1 %vm250_vm2, %v246_v42 }
 0x253   :  { %2466 = vmatmul.mubr.msk.f32.gmra.mrb[26].mxu1 %vm250_vm2, %v247_v43 }
 0x254   :  { %2468 = vmatprep.mubr.msk.f32.mxu1 %vm250_vm2, %v248_v44 }
 0x257   :  { %2469 = vmatmul.mubr.msk.f32.gmra.mrb[28].mxu1 %vm250_vm2, %v249_v45  ;;  %v577_v45 = vld [vmem:[%s4078_s9 + $0x88] sm:$0xff] }
 0x289   :  { %v2782_v46 = vpop.permute.xlu0 %2781 }
 0x28a   :  { %v2784_v47 = vunpack.i.h.bf16 %v2782_v46  ;;  %v2783_v48 = vunpack.i.l.bf16 %v2782_v46  ;;  %v576_v46 = vld [vmem:[%s4078_s9 + $0x80] sm:$0xff] }
 0x28c   :  { %v2661_v49 = vpack.c.bf16 %v2784_v47, %v2783_v48 }
 0x28d   :  { %v2787_v50 = vpop.permute.xlu1 %2786 }
 0x28e   :  { %v2789_v51 = vunpack.i.h.bf16 %v2787_v50  ;;  %v2788_v52 = vunpack.i.l.bf16 %v2787_v50  ;;  %2663 = vmatprep.subr.msk.bf16.mxu0 %vm2662_vm6, %v2661_v49 }
 0x28f   :  { %2666 = vmatpush3.bf16.xpose.msk.msra.mxu0 %vm2662_vm6, %v2661_v49 }
 0x290   :  { %v2667_v53 = vpack.c.bf16 %v2789_v51, %v2788_v52  ;;  %v579_v51 = vld [vmem:[%s4078_s9 + $0x98] sm:$0xff]  ;;  %v578_v52 = vld [vmem:[%s4078_s9 + $0x90] sm:$0xff] }
 0x292   :  { %2669 = vmatprep.subr.msk.bf16.mxu0 %vm2662_vm6, %v2667_v53 }
 0x297   :  { %2672 = vmatpush3.bf16.xpose.msk.msra.mxu0 %vm2662_vm6, %v2667_v53 }
 0x2f2   :  { %v2428_v55 = vpop.f32.mrb[0].mxu1 }
 0x2f3   :  { %v411_v57 = vpop.f32.mrb[1].mxu1  ;;  %v591_v60 = vmul.f32 %v2428_v55, %v561_v56 }
 0x2f4   :  { %v590_v58 = vmul.f32 %v560_v54, %v411_v57  ;;  %v581_v57 = vld [vmem:[%s4078_s9 + $0xa8] sm:$0xff] }
 0x2f6   :  { %v2431_v62 = vpop.f32.mrb[2].mxu1  ;;  %2479 = vmatprep.mubr.msk.f32.mxu0 %vm54_vm0, %v590_v58  ;;  %v580_v58 = vld [vmem:[%s4078_s9 + $0xa0] sm:$0xff] }
 0x2f7   :  { %v593_v63 = vmul.f32 %v2431_v62, %v563_v59  ;;  %v421_v0 = vpop.f32.mrb[3].mxu1  ;;  %2480 = vmatmul.mubr.msk.f32.vlgmr.msra.gmra.mrb[4].mxu0 %vm54_vm0, %v591_v60 }
 0x2f8   :  { %v592_v1 = vmul.f32 %v562_v61, %v421_v0  ;;  %v582_v0 = vld [vmem:[%s4078_s9 + $0xb0] sm:$0xff] }
 0x2fa   :  { %v2434_v5 = vpop.f32.mrb[4].mxu1  ;;  %2482 = vmatprep.mubr.msk.f32.mxu0 %vm54_vm0, %v592_v1 }
 0x2fb   :  { %v595_v6 = vmul.f32 %v2434_v5, %v565_v2  ;;  %v431_v10 = vpop.f32.mrb[5].mxu1  ;;  %2483 = vmatmul.mubr.msk.f32.gmra.mrb[6].mxu0 %vm54_vm0, %v593_v63  ;;  %v583_v63 = vld [vmem:[%s4078_s9 + $0xb8] sm:$0xff] }
 0x2fc   :  { %v594_v11 = vmul.f32 %v564_v4, %v431_v10  ;;  %v584_v10 = vld [vmem:[%s4078_s9 + $0xc0] sm:$0xff] }
 0x2fe   :  { %v2437_v17 = vpop.f32.mrb[6].mxu1  ;;  %2485 = vmatprep.mubr.msk.f32.mxu0 %vm54_vm0, %v594_v11 }
 0x2ff   :  { %v597_v18 = vmul.f32 %v2437_v17, %v567_v13  ;;  %v441_v19 = vpop.f32.mrb[7].mxu1  ;;  %2486 = vmatmul.mubr.msk.f32.gmra.mrb[8].mxu0 %vm54_vm0, %v595_v6  ;;  %v585_v6 = vld [vmem:[%s4078_s9 + $0xc8] sm:$0xff] }
 0x300   :  { %v596_v20 = vmul.f32 %v566_v16, %v441_v19  ;;  %v586_v19 = vld [vmem:[%s4078_s9 + $0xd0] sm:$0xff] }
 0x302   :  { %v2440_v23 = vpop.f32.mrb[8].mxu1  ;;  %2488 = vmatprep.mubr.msk.f32.mxu0 %vm54_vm0, %v596_v20 }
 0x303   :  { %v599_v24 = vmul.f32 %v2440_v23, %v569_v21  ;;  %v451_v25 = vpop.f32.mrb[9].mxu1  ;;  %2489 = vmatmul.mubr.msk.f32.gmra.mrb[10].mxu0 %vm54_vm0, %v597_v18  ;;  %v587_v18 = vld [vmem:[%s4078_s9 + $0xd8] sm:$0xff] }
 0x304   :  { %v598_v26 = vmul.f32 %v568_v22, %v451_v25  ;;  %v588_v25 = vld [vmem:[%s4078_s9 + $0xe0] sm:$0xff] }
 0x306   :  { %v2443_v29 = vpop.f32.mrb[10].mxu1  ;;  %2491 = vmatprep.mubr.msk.f32.mxu0 %vm54_vm0, %v598_v26 }
 0x307   :  { %v601_v30 = vmul.f32 %v2443_v29, %v571_v27  ;;  %v461_v31 = vpop.f32.mrb[11].mxu1  ;;  %2492 = vmatmul.mubr.msk.f32.gmra.mrb[12].mxu0 %vm54_vm0, %v599_v24  ;;  %v589_v24 = vld [vmem:[%s4078_s9 + $0xe8] sm:$0xff] }
 0x308   :  { %v600_v32 = vmul.f32 %v570_v28, %v461_v31  ;;  %v620_v31 = vld [vmem:[%s4079_s10] sm:$0xff] }
 0x30a   :  { %v2446_v35 = vpop.f32.mrb[12].mxu1  ;;  %2494 = vmatprep.mubr.msk.f32.mxu0 %vm54_vm0, %v600_v32 }
 0x30b   :  { %v603_v36 = vmul.f32 %v2446_v35, %v573_v33  ;;  %v471_v37 = vpop.f32.mrb[13].mxu1  ;;  %2495 = vmatmul.mubr.msk.f32.gmra.mrb[14].mxu0 %vm54_vm0, %v601_v30  ;;  %v621_v30 = vld [vmem:[%s4079_s10 + $0x8] sm:$0xff] }
 0x30c   :  { %v602_v38 = vmul.f32 %v572_v34, %v471_v37 }
 0x30e   :  { %v2449_v41 = vpop.f32.mrb[14].mxu1  ;;  %2497 = vmatprep.mubr.msk.f32.mxu0 %vm54_vm0, %v602_v38  ;;  %v622_v38 = vld [vmem:[%s4079_s10 + $0x10] sm:$0xff] }
 0x30f   :  { %v605_v42 = vmul.f32 %v2449_v41, %v575_v39  ;;  %v481_v43 = vpop.f32.mrb[15].mxu1  ;;  %2498 = vmatmul.mubr.msk.f32.gmra.mrb[16].mxu0 %vm54_vm0, %v603_v36  ;;  %v623_v36 = vld [vmem:[%s4079_s10 + $0x18] sm:$0xff] }
 0x310   :  { %v604_v44 = vmul.f32 %v574_v40, %v481_v43 }
 0x312   :  { %v2452_v47 = vpop.f32.mrb[16].mxu1  ;;  %2500 = vmatprep.mubr.msk.f32.mxu0 %vm54_vm0, %v604_v44  ;;  %v625_v44 = vld [vmem:[%s4079_s10 + $0x28] sm:$0xff] }
 0x313   :  { %v607_v48 = vmul.f32 %v2452_v47, %v577_v45  ;;  %v491_v49 = vpop.f32.mrb[17].mxu1  ;;  %2501 = vmatmul.mubr.msk.f32.gmra.mrb[18].mxu0 %vm54_vm0, %v605_v42  ;;  %v624_v45 = vld [vmem:[%s4079_s10 + $0x20] sm:$0xff] }
 0x314   :  { %v606_v50 = vmul.f32 %v576_v46, %v491_v49 }
 0x316   :  { %v2455_v53 = vpop.f32.mrb[18].mxu1  ;;  %2503 = vmatprep.mubr.msk.f32.mxu0 %vm54_vm0, %v606_v50 }
 0x317   :  { %v609_v54 = vmul.f32 %v2455_v53, %v579_v51  ;;  %v501_v55 = vpop.f32.mrb[19].mxu1  ;;  %2504 = vmatmul.mubr.msk.f32.gmra.mrb[20].mxu0 %vm54_vm0, %v607_v48  ;;  %v626_v53 = vld [vmem:[%s4079_s10 + $0x30] sm:$0xff] }
 0x318   :  { %v608_v56 = vmul.f32 %v578_v52, %v501_v55  ;;  %v627_v52 = vld [vmem:[%s4079_s10 + $0x38] sm:$0xff] }
 0x31a   :  { %v2458_v59 = vpop.f32.mrb[20].mxu1  ;;  %2506 = vmatprep.mubr.msk.f32.mxu0 %vm54_vm0, %v608_v56 }
 0x31b   :  { %v611_v60 = vmul.f32 %v2458_v59, %v581_v57  ;;  %v511_v61 = vpop.f32.mrb[21].mxu1  ;;  %2507 = vmatmul.mubr.msk.f32.gmra.mrb[22].mxu0 %vm54_vm0, %v609_v54 }
 0x31c   :  { %v610_v62 = vmul.f32 %v580_v58, %v511_v61  ;;  %v628_v61 = vld [vmem:[%s4079_s10 + $0x40] sm:$0xff] }
 0x31e   :  { %v2461_v1 = vpop.f32.mrb[22].mxu1  ;;  %2509 = vmatprep.mubr.msk.f32.mxu0 %vm54_vm0, %v610_v62 }
 0x31f   :  { %v613_v2 = vmul.f32 %v2461_v1, %v583_v63  ;;  %v521_v4 = vpop.f32.mrb[23].mxu1  ;;  %2510 = vmatmul.mubr.msk.f32.gmra.mrb[24].mxu0 %vm54_vm0, %v611_v60  ;;  %v629_v60 = vld [vmem:[%s4079_s10 + $0x48] sm:$0xff] }
 0x320   :  { %v612_v5 = vmul.f32 %v582_v0, %v521_v4 }
 0x322   :  { %v2464_v11 = vpop.f32.mrb[24].mxu1  ;;  %2512 = vmatprep.mubr.msk.f32.mxu0 %vm54_vm0, %v612_v5  ;;  %v631_v5 = vld [vmem:[%s4079_s10 + $0x58] sm:$0xff] }
 0x323   :  { %v615_v13 = vmul.f32 %v2464_v11, %v585_v6  ;;  %v531_v16 = vpop.f32.mrb[25].mxu1  ;;  %2513 = vmatmul.mubr.msk.f32.gmra.mrb[26].mxu0 %vm54_vm0, %v613_v2  ;;  %v630_v6 = vld [vmem:[%s4079_s10 + $0x50] sm:$0xff] }
 0x324   :  { %v614_v17 = vmul.f32 %v584_v10, %v531_v16 }
 0x326   :  { %v2467_v20 = vpop.f32.mrb[26].mxu1  ;;  %2515 = vmatprep.mubr.msk.f32.mxu0 %vm54_vm0, %v614_v17 }
 0x327   :  { %v617_v21 = vmul.f32 %v2467_v20, %v587_v18  ;;  %v541_v22 = vpop.f32.mrb[27].mxu1  ;;  %2516 = vmatmul.mubr.msk.f32.gmra.mrb[28].mxu0 %vm54_vm0, %v615_v13  ;;  %v632_v20 = vld [vmem:[%s4079_s10 + $0x60] sm:$0xff] }
 0x328   :  { %v616_v23 = vmul.f32 %v586_v19, %v541_v22  ;;  %v633_v19 = vld [vmem:[%s4079_s10 + $0x68] sm:$0xff] }
 0x32a   :  { %v2470_v26 = vpop.f32.mrb[28].mxu1  ;;  %2518 = vmatprep.mubr.msk.f32.mxu0 %vm54_vm0, %v616_v23 }
 0x32b   :  { %v619_v27 = vmul.f32 %v2470_v26, %v589_v24  ;;  %v551_v28 = vpop.f32.mrb[29].mxu1  ;;  %2519 = vmatmul.mubr.msk.f32.gmra.mrb[30].mxu0 %vm54_vm0, %v617_v21 }
 0x32c   :  { %v618_v29 = vmul.f32 %v588_v25, %v551_v28  ;;  %v634_v28 = vld [vmem:[%s4079_s10 + $0x70] sm:$0xff] }
 0x32e   :  { %2521 = vmatprep.mubr.msk.f32.mxu0 %vm54_vm0, %v618_v29 }
 0x32f   :  { %2522 = vmatmul.mubr.msk.f32.gmra.mrb[32].mxu0 %vm54_vm0, %v619_v27  ;;  %v635_v27 = vld [vmem:[%s4079_s10 + $0x78] sm:$0xff] }
 0x3ca   :  { %v2481_v32 = vpop.f32.mrb[4].mxu0 }
 0x3cb   :  { %v3364_v33 = vadd.f32 %v2481_v32, %v621_v30  ;;  %v825_v34 = vpop.f32.mrb[5].mxu0 }
 0x3cc   :  { %v3366_v35 = vadd.f32 %v825_v34, %v620_v31 }
 0x3cd   :  { %v977_v37 = vsel %vm250_vm2, %v3364_v33, -inf }
 0x3ce   :  { %978 = vmax.xlane.f32.xlu0 %v977_v37  ;;  %v2484_v39 = vpop.f32.mrb[6].mxu0  ;;  %v974_v40 = vsel %vm250_vm2, %v3366_v35, -inf  ;;  %v637_v37 = vld [vmem:[%s4079_s10 + $0x88] sm:$0xff] }
 0x3cf   :  { %v3378_v41 = vadd.f32 %v2484_v39, %v623_v36  ;;  %v835_v42 = vpop.f32.mrb[7].mxu0  ;;  %975 = vmax.xlane.f32.xlu1 %v974_v40 }
 0x3d0   :  { %v3380_v43 = vadd.f32 %v835_v42, %v622_v38  ;;  %v636_v38 = vld [vmem:[%s4079_s10 + $0x80] sm:$0xff] }
 0x3d1   :  { %v983_v46 = vsel %vm250_vm2, %v3378_v41, -inf }
 0x3d2   :  { %v2487_v47 = vpop.f32.mrb[8].mxu0  ;;  %v980_v48 = vsel %vm250_vm2, %v3380_v43, -inf }
 0x3d3   :  { %v3392_v49 = vadd.f32 %v2487_v47, %v625_v44  ;;  %v845_v50 = vpop.f32.mrb[9].mxu0  ;;  %981 = vmax.xlane.f32.xlu0 %v980_v48  ;;  %984 = vmax.xlane.f32.xlu1 %v983_v46  ;;  %v639_v47 = vld [vmem:[%s4079_s10 + $0x98] sm:$0xff]  ;;  %v638_v48 = vld [vmem:[%s4079_s10 + $0x90] sm:$0xff] }
 0x3d4   :  { %v3394_v51 = vadd.f32 %v845_v50, %v624_v45 }
 0x3d5   :  { %v989_v54 = vsel %vm250_vm2, %v3392_v49, -inf }
 0x3d6   :  { %v2490_v55 = vpop.f32.mrb[10].mxu0  ;;  %v986_v56 = vsel %vm250_vm2, %v3394_v51, -inf }
 0x3d7   :  { %v3406_v57 = vadd.f32 %v2490_v55, %v627_v52  ;;  %v855_v58 = vpop.f32.mrb[11].mxu0  ;;  %987 = vmax.xlane.f32.xlu0 %v986_v56  ;;  %990 = vmax.xlane.f32.xlu1 %v989_v54 }
 0x3d8   :  { %v3408_v59 = vadd.f32 %v855_v58, %v626_v53  ;;  %v641_v58 = vld [vmem:[%s4079_s10 + $0xa8] sm:$0xff] }
 0x3d9   :  { %v995_v62 = vsel %vm250_vm2, %v3406_v57, -inf }
 0x3da   :  { %v2493_v63 = vpop.f32.mrb[12].mxu0  ;;  %v992_v0 = vsel %vm250_vm2, %v3408_v59, -inf }
 0x3db   :  { %v3420_v1 = vadd.f32 %v2493_v63, %v629_v60  ;;  %v865_v2 = vpop.f32.mrb[13].mxu0  ;;  %993 = vmax.xlane.f32.xlu0 %v992_v0  ;;  %996 = vmax.xlane.f32.xlu1 %v995_v62  ;;  %v640_v60 = vld [vmem:[%s4079_s10 + $0xa0] sm:$0xff] }
 0x3dc   :  { %v3422_v4 = vadd.f32 %v865_v2, %v628_v61 }
 0x3dd   :  { %v1001_v10 = vsel %vm250_vm2, %v3420_v1, -inf }
 0x3de   :  { %v2496_v11 = vpop.f32.mrb[14].mxu0  ;;  %v998_v13 = vsel %vm250_vm2, %v3422_v4, -inf }
 0x3df   :  { %v3434_v16 = vadd.f32 %v2496_v11, %v631_v5  ;;  %v875_v17 = vpop.f32.mrb[15].mxu0  ;;  %999 = vmax.xlane.f32.xlu0 %v998_v13  ;;  %1002 = vmax.xlane.f32.xlu1 %v1001_v10  ;;  %v642_v10 = vld [vmem:[%s4079_s10 + $0xb0] sm:$0xff] }
 0x3e0   :  { %v3436_v18 = vadd.f32 %v875_v17, %v630_v6  ;;  %v643_v6 = vld [vmem:[%s4079_s10 + $0xb8] sm:$0xff] }
 0x3e1   :  { %v1007_v21 = vsel %vm250_vm2, %v3434_v16, -inf }
 0x3e2   :  { %v2499_v22 = vpop.f32.mrb[16].mxu0  ;;  %v1004_v23 = vsel %vm250_vm2, %v3436_v18, -inf }
 0x3e3   :  { %v3448_v24 = vadd.f32 %v2499_v22, %v633_v19  ;;  %v885_v25 = vpop.f32.mrb[17].mxu0  ;;  %1005 = vmax.xlane.f32.xlu0 %v1004_v23  ;;  %1008 = vmax.xlane.f32.xlu1 %v1007_v21  ;;  %v645_v22 = vld [vmem:[%s4079_s10 + $0xc8] sm:$0xff]  ;;  %v644_v23 = vld [vmem:[%s4079_s10 + $0xc0] sm:$0xff] }
 0x3e4   :  { %v3450_v26 = vadd.f32 %v885_v25, %v632_v20 }
 0x3e5   :  { %v1013_v29 = vsel %vm250_vm2, %v3448_v24, -inf }
 0x3e6   :  { %v2502_v30 = vpop.f32.mrb[18].mxu0  ;;  %v1010_v31 = vsel %vm250_vm2, %v3450_v26, -inf }
 0x3e7   :  { %v3462_v32 = vadd.f32 %v2502_v30, %v635_v27  ;;  %v895_v34 = vpop.f32.mrb[19].mxu0  ;;  %1011 = vmax.xlane.f32.xlu0 %v1010_v31  ;;  %1014 = vmax.xlane.f32.xlu1 %v1013_v29 }
 0x3e8   :  { %v3464_v36 = vadd.f32 %v895_v34, %v634_v28  ;;  %v647_v34 = vld [vmem:[%s4079_s10 + $0xd8] sm:$0xff] }
 0x3e9   :  { %v1019_v39 = vsel %vm250_vm2, %v3462_v32, -inf }
 0x3ea   :  { %v2505_v40 = vpop.f32.mrb[20].mxu0  ;;  %v1016_v42 = vsel %vm250_vm2, %v3464_v36, -inf }
 0x3eb   :  { %v3476_v44 = vadd.f32 %v2505_v40, %v637_v37  ;;  %v905_v45 = vpop.f32.mrb[21].mxu0  ;;  %1017 = vmax.xlane.f32.xlu0 %v1016_v42  ;;  %1020 = vmax.xlane.f32.xlu1 %v1019_v39  ;;  %v646_v37 = vld [vmem:[%s4079_s10 + $0xd0] sm:$0xff] }
 0x3ec   :  { %v3478_v46 = vadd.f32 %v905_v45, %v636_v38 }
 0x3ed   :  { %v1025_v50 = vsel %vm250_vm2, %v3476_v44, -inf }
 0x3ee   :  { %v2508_v52 = vpop.f32.mrb[22].mxu0  ;;  %v1022_v53 = vsel %vm250_vm2, %v3478_v46, -inf }
 0x3ef   :  { %v3490_v54 = vadd.f32 %v2508_v52, %v639_v47  ;;  %v915_v55 = vpop.f32.mrb[23].mxu0  ;;  %1023 = vmax.xlane.f32.xlu0 %v1022_v53  ;;  %1026 = vmax.xlane.f32.xlu1 %v1025_v50  ;;  %v648_v50 = vld [vmem:[%s4079_s10 + $0xe0] sm:$0xff] }
 0x3f0   :  { %v3492_v56 = vadd.f32 %v915_v55, %v638_v48  ;;  %v649_v48 = vld [vmem:[%s4079_s10 + $0xe8] sm:$0xff]  ;;  %s2968_s10 = smov 64  }
 0x3f1   :  { %v1031_v61 = vsel %vm250_vm2, %v3490_v54, -inf }
 0x3f2   :  { %v2511_v62 = vpop.f32.mrb[24].mxu0  ;;  %v1028_v63 = vsel %vm250_vm2, %v3492_v56, -inf }
 0x3f3   :  { %v3504_v0 = vadd.f32 %v2511_v62, %v641_v58  ;;  %v925_v2 = vpop.f32.mrb[25].mxu0  ;;  %1029 = vmax.xlane.f32.xlu0 %v1028_v63  ;;  %1032 = vmax.xlane.f32.xlu1 %v1031_v61 }
 0x3f4   :  { %v3506_v5 = vadd.f32 %v925_v2, %v640_v60 }
 0x3f5   :  { %v1037_v11 = vsel %vm250_vm2, %v3504_v0, -inf }
 0x3f6   :  { %v2514_v13 = vpop.f32.mrb[26].mxu0  ;;  %v1034_v17 = vsel %vm250_vm2, %v3506_v5, -inf }
 0x3f7   :  { %v3518_v19 = vadd.f32 %v2514_v13, %v643_v6  ;;  %v935_v20 = vpop.f32.mrb[27].mxu0  ;;  %1035 = vmax.xlane.f32.xlu0 %v1034_v17  ;;  %1038 = vmax.xlane.f32.xlu1 %v1037_v11 }
 0x3f8   :  { %v3520_v21 = vadd.f32 %v935_v20, %v642_v10 }
 0x3f9   :  { %v1043_v25 = vsel %vm250_vm2, %v3518_v19, -inf }
 0x3fa   :  { %v2517_v27 = vpop.f32.mrb[28].mxu0  ;;  %v1040_v28 = vsel %vm250_vm2, %v3520_v21, -inf }
 0x3fb   :  { %v3532_v29 = vadd.f32 %v2517_v27, %v645_v22  ;;  %v945_v30 = vpop.f32.mrb[29].mxu0  ;;  %1041 = vmax.xlane.f32.xlu0 %v1040_v28  ;;  %1044 = vmax.xlane.f32.xlu1 %v1043_v25 }
 0x3fc   :  { %v3534_v31 = vadd.f32 %v945_v30, %v644_v23 }
 0x3fd   :  { %v1049_v38 = vsel %vm250_vm2, %v3532_v29, -inf }
 0x3fe   :  { %v2520_v39 = vpop.f32.mrb[30].mxu0  ;;  %v1046_v40 = vsel %vm250_vm2, %v3534_v31, -inf }
 0x3ff   :  { %v3546_v42 = vadd.f32 %v2520_v39, %v647_v34  ;;  %v955_v45 = vpop.f32.mrb[31].mxu0  ;;  %1047 = vmax.xlane.f32.xlu0 %v1046_v40  ;;  %1050 = vmax.xlane.f32.xlu1 %v1049_v38 }
 0x400   :  { %v3548_v47 = vadd.f32 %v955_v45, %v646_v37 }
 0x401   :  { %v1055_v52 = vsel %vm250_vm2, %v3546_v42, -inf }
 0x402   :  { %v2523_v53 = vpop.f32.mrb[32].mxu0  ;;  %v1052_v55 = vsel %vm250_vm2, %v3548_v47, -inf }
 0x403   :  { %v3560_v58 = vadd.f32 %v2523_v53, %v649_v48  ;;  %v965_v60 = vpop.f32.mrb[33].mxu0  ;;  %1053 = vmax.xlane.f32.xlu0 %v1052_v55  ;;  %1056 = vmax.xlane.f32.xlu1 %v1055_v52 }
 0x404   :  { %v3562_v61 = vadd.f32 %v965_v60, %v648_v50 }
 0x405   :  { %v1061_v62 = vsel %vm250_vm2, %v3560_v58, -inf }
 0x406   :  { %v1058_v63 = vsel %vm250_vm2, %v3562_v61, -inf }
 0x407   :  { %1059 = vmax.xlane.f32.xlu0 %v1058_v63  ;;  %1062 = vmax.xlane.f32.xlu1 %v1061_v62 }
 0x41d   :  { %2791 = vrot.lane.b32.xlu0 %v3106_v9, %s2968_s10 }
 0x45b   :  { %v979_v2 = vpop.xlane.xlu0 %978 }
 0x45c   :  { %v1065_v6 = vsub.f32 %v3364_v33, %v979_v2  ;;  %v976_v10 = vpop.xlane.xlu1 %975 }
 0x45d   :  { %v1064_v11 = vsub.f32 %v3366_v35, %v976_v10 }
 0x45e   :  { %v1096_v13 = vmul.f32 1.442695, %v1065_v6 }
 0x45f   :  { %v1094_v17 = vmul.f32 1.442695, %v1064_v11 }
 0x460   :  { %2808 = vpow2.f32 %v1096_v13  ;;  %v982_v20 = vpop.xlane.xlu0 %981  ;;  %v985_v22 = vpop.xlane.xlu1 %984 }
 0x461   :  { %2810 = vpow2.f32 %v1094_v17  ;;  %v1066_v23 = vsub.f32 %v3380_v43, %v982_v20  ;;  %v1067_v25 = vsub.f32 %v3378_v41, %v985_v22 }
 0x463   :  { %v1098_v27 = vmul.f32 1.442695, %v1066_v23  ;;  %v1100_v28 = vmul.f32 1.442695, %v1067_v25 }
 0x464   :  { %v988_v30 = vpop.xlane.xlu0 %987  ;;  %v991_v9 = vpop.xlane.xlu1 %990 }
 0x465   :  { %2812 = vpow2.f32 %v1098_v27  ;;  %v1068_v33 = vsub.f32 %v3394_v51, %v988_v30  ;;  %v1069_v34 = vsub.f32 %v3392_v49, %v991_v9 }
 0x466   :  { %2814 = vpow2.f32 %v1100_v28 }
 0x467   :  { %v1102_v35 = vmul.f32 1.442695, %v1068_v33  ;;  %v1104_v37 = vmul.f32 1.442695, %v1069_v34 }
 0x468   :  { %v994_v38 = vpop.xlane.xlu0 %993  ;;  %v997_v39 = vpop.xlane.xlu1 %996 }
 0x469   :  { %2816 = vpow2.f32 %v1102_v35  ;;  %v1070_v40 = vsub.f32 %v3408_v59, %v994_v38  ;;  %v1071_v43 = vsub.f32 %v3406_v57, %v997_v39 }
 0x46a   :  { %v3578_v41 = vpop.eup %2808  ;;  %2818 = vpow2.f32 %v1104_v37 }
 0x46b   :  { %v3580_v45 = vpop.eup %2810  ;;  %v1106_v48 = vmul.f32 1.442695, %v1070_v40  ;;  %v1108_v50 = vmul.f32 1.442695, %v1071_v43  ;;  %v1157_v49 = vsel %vm250_vm2, %v3578_v41, 0.0 }
 0x46c   :  { %v1000_v51 = vpop.xlane.xlu0 %999  ;;  %1158 = vadd.xlane.f32.xlu1 %v1157_v49  ;;  %v1003_v52 = vpop.xlane.xlu1 %1002  ;;  %v1154_v53 = vsel %vm250_vm2, %v3580_v45, 0.0 }
 0x46d   :  { %2820 = vpow2.f32 %v1106_v48  ;;  %v1072_v59 = vsub.f32 %v3422_v4, %v1000_v51  ;;  %v1073_v57 = vsub.f32 %v3420_v1, %v1003_v52  ;;  %1155 = vadd.xlane.f32.xlu0 %v1154_v53 }
 0x46e   :  { %2822 = vpow2.f32 %v1108_v50 }
 0x46f   :  { %v3588_v55 = vpop.eup %2812  ;;  %v1110_v60 = vmul.f32 1.442695, %v1072_v59  ;;  %v1112_v62 = vmul.f32 1.442695, %v1073_v57 }
 0x470   :  { %v3590_v63 = vpop.eup %2814  ;;  %v1006_v2 = vpop.xlane.xlu0 %1005  ;;  %v1160_v10 = vsel %vm250_vm2, %v3588_v55, 0.0 }
 0x471   :  { %v1009_v6 = vpop.xlane.xlu1 %1008  ;;  %2824 = vpow2.f32 %v1110_v60  ;;  %v1074_v11 = vsub.f32 %v3436_v18, %v1006_v2  ;;  %1161 = vadd.xlane.f32.xlu0 %v1160_v10  ;;  %v1163_v1 = vsel %vm250_vm2, %v3590_v63, 0.0 }
 0x472   :  { %v1075_v4 = vsub.f32 %v3434_v16, %v1009_v6  ;;  %2826 = vpow2.f32 %v1112_v62  ;;  %1164 = vadd.xlane.f32.xlu1 %v1163_v1 }
 0x473   :  { %v3598_v13 = vpop.eup %2816  ;;  %v1114_v22 = vmul.f32 1.442695, %v1074_v11 }
 0x474   :  { %v1116_v17 = vmul.f32 1.442695, %v1075_v4  ;;  %v3600_v20 = vpop.eup %2818  ;;  %v1012_v23 = vpop.xlane.xlu0 %1011  ;;  %v1166_v18 = vsel %vm250_vm2, %v3598_v13, 0.0 }
 0x475   :  { %v3602_v25 = vpop.xlane.xlu1 %1014  ;;  %v1076_v16 = vsub.f32 %v3450_v26, %v1012_v23  ;;  %1167 = vadd.xlane.f32.xlu0 %v1166_v18  ;;  %v1169_v27 = vsel %vm250_vm2, %v3600_v20, 0.0 }
 0x476   :  { %2828 = vpow2.f32 %v1116_v17  ;;  %1170 = vadd.xlane.f32.xlu1 %v1169_v27 }
 0x477   :  { %v3609_v28 = vpop.eup %2820  ;;  %v1118_v30 = vmul.f32 1.442695, %v1076_v16  ;;  %2830 = vpow2.f32 %v1114_v22 }
 0x478   :  { %v3611_v9 = vpop.eup %2822  ;;  %v1018_v33 = vpop.xlane.xlu0 %1017  ;;  %v1172_v35 = vsel %vm250_vm2, %v3609_v28, 0.0 }
 0x479   :  { %v1021_v34 = vpop.xlane.xlu1 %1020  ;;  %2832 = vpow2.f32 %v1118_v30  ;;  %v1078_v26 = vsub.f32 %v3464_v36, %v1018_v33  ;;  %1173 = vadd.xlane.f32.xlu0 %v1172_v35  ;;  %v1175_v38 = vsel %vm250_vm2, %v3611_v9, 0.0 }
 0x47a   :  { %v1079_v37 = vsub.f32 %v3462_v32, %v1021_v34  ;;  %1176 = vadd.xlane.f32.xlu1 %v1175_v38 }
 0x47b   :  { %v3619_v39 = vpop.eup %2824  ;;  %v1122_v48 = vmul.f32 1.442695, %v1078_v26 }
 0x47c   :  { %v1124_v40 = vmul.f32 1.442695, %v1079_v37  ;;  %v3621_v43 = vpop.eup %2826  ;;  %v1024_v50 = vpop.xlane.xlu0 %1023  ;;  %v1178_v49 = vsel %vm250_vm2, %v3619_v39, 0.0 }
 0x47d   :  { %v1080_v51 = vsub.f32 %v3478_v46, %v1024_v50  ;;  %1179 = vadd.xlane.f32.xlu0 %v1178_v49  ;;  %v1181_v32 = vsel %vm250_vm2, %v3621_v43, 0.0 }
 0x47e   :  { %2834 = vpow2.f32 %v1124_v40  ;;  %1182 = vadd.xlane.f32.xlu1 %v1181_v32 }
 0x47f   :  { %2836 = vpow2.f32 %v1122_v48  ;;  %v1126_v52 = vmul.f32 1.442695, %v1080_v51 }
 0x480   :  { %v3628_v36 = vpop.eup %2828  ;;  %v1030_v53 = vpop.xlane.xlu0 %1029 }
 0x481   :  { %v1082_v59 = vsub.f32 %v3492_v56, %v1030_v53  ;;  %v1187_v57 = vsel %vm250_vm2, %v3628_v36, 0.0  ;;  %v3633_v60 = vpop.eup %2830  ;;  %2838 = vpow2.f32 %v1126_v52 }
 0x482   :  { %1188 = vadd.xlane.f32.xlu1 %v1187_v57  ;;  %v1184_v56 = vsel %vm250_vm2, %v3633_v60, 0.0 }
 0x483   :  { %v3635_v46 = vpop.eup %2832  ;;  %v1130_v62 = vmul.f32 1.442695, %v1082_v59 }
 0x484   :  { %v1036_v2 = vpop.xlane.xlu0 %1035  ;;  %v1190_v6 = vsel %vm250_vm2, %v3635_v46, 0.0 }
 0x485   :  { %v1084_v10 = vsub.f32 %v3506_v5, %v1036_v2  ;;  %1191 = vadd.xlane.f32.xlu0 %v1190_v6  ;;  %2840 = vpow2.f32 %v1130_v62  ;;  %v1077_v6 = vsub.f32 %v3448_v24, %v3602_v25 }
 0x486   :  { %1185 = vadd.xlane.f32.xlu1 %v1184_v56 }
 0x487   :  { %v1134_v4 = vmul.f32 1.442695, %v1084_v10 }
 0x488   :  { %v3642_v11 = vpop.eup %2834  ;;  %v1042_v1 = vpop.xlane.xlu0 %1041 }
 0x489   :  { %v1086_v17 = vsub.f32 %v3520_v21, %v1042_v1  ;;  %v1199_v22 = vsel %vm250_vm2, %v3642_v11, 0.0  ;;  %v3647_v23 = vpop.eup %2836  ;;  %2842 = vpow2.f32 %v1134_v4  ;;  %v1120_v1 = vmul.f32 1.442695, %v1077_v6 }
 0x48a   :  { %1200 = vadd.xlane.f32.xlu0 %v1199_v22  ;;  %v1196_v27 = vsel %vm250_vm2, %v3647_v23, 0.0 }
 0x48b   :  { %v1138_v5 = vmul.f32 1.442695, %v1086_v17  ;;  %v3652_v30 = vpop.eup %2838 }
 0x48c   :  { %v1048_v18 = vpop.xlane.xlu0 %1047  ;;  %v1202_v35 = vsel %vm250_vm2, %v3652_v30, 0.0 }
 0x48d   :  { %v1088_v16 = vsub.f32 %v3534_v31, %v1048_v18  ;;  %2844 = vpow2.f32 %v1138_v5 }
 0x48e   :  { %1197 = vadd.xlane.f32.xlu0 %v1196_v27 }
 0x48f   :  { %v1142_v33 = vmul.f32 1.442695, %v1088_v16  ;;  %v3657_v26 = vpop.eup %2840 }
 0x490   :  { %v1054_v21 = vpop.xlane.xlu0 %1053  ;;  %v1208_v40 = vsel %vm250_vm2, %v3657_v26, 0.0 }
 0x491   :  { %v1090_v34 = vsub.f32 %v3548_v47, %v1054_v21  ;;  %2846 = vpow2.f32 %v1142_v33 }
 0x492   :  { %1203 = vadd.xlane.f32.xlu0 %v1202_v35 }
 0x493   :  { %v1146_v37 = vmul.f32 1.442695, %v1090_v34  ;;  %v3662_v48 = vpop.eup %2842 }
 0x494   :  { %v1060_v31 = vpop.xlane.xlu0 %1059  ;;  %v1214_v32 = vsel %vm250_vm2, %v3662_v48, 0.0 }
 0x495   :  { %v1092_v38 = vsub.f32 %v3562_v61, %v1060_v31  ;;  %2848 = vpow2.f32 %v1146_v37  ;;  %v1027_v61 = vpop.xlane.xlu1 %1026 }
 0x496   :  { %1209 = vadd.xlane.f32.xlu0 %v1208_v40  ;;  %v1081_v17 = vsub.f32 %v3476_v44, %v1027_v61 }
 0x497   :  { %2796 = vrot.lane.b32.xlu1 %v3113_v15, %s2968_s10  ;;  %v1150_v47 = vmul.f32 1.442695, %v1092_v38  ;;  %v3668_v52 = vpop.eup %2844 }
 0x498   :  { %v2792_v50 = vpop.permute.xlu0 %2791  ;;  %v1220_v59 = vsel %vm250_vm2, %v3668_v52, 0.0  ;;  %v1128_v18 = vmul.f32 1.442695, %v1081_v17 }
 0x499   :  { %v2794_v49 = vunpack.i.h.bf16 %v2792_v50  ;;  %v2793_v51 = vunpack.i.l.bf16 %v2792_v50  ;;  %2850 = vpow2.f32 %v1150_v47  ;;  %v1033_v15 = vpop.xlane.xlu1 %1032 }
 0x49a   :  { %1215 = vadd.xlane.f32.xlu0 %v1214_v32  ;;  %2852 = vpow2.f32 %v1120_v1  ;;  %v1083_v16 = vsub.f32 %v3490_v54, %v1033_v15 }
 0x49b   :  { %v2673_v53 = vpack.c.bf16 %v2794_v49, %v2793_v51  ;;  %v3672_v57 = vpop.eup %2846  ;;  %2854 = vpow2.f32 %v1128_v18 }
 0x49c   :  { %v1226_v62 = vsel %vm250_vm2, %v3672_v57, 0.0  ;;  %v1132_v24 = vmul.f32 1.442695, %v1083_v16 }
 0x49d   :  { %2674 = vmatprep.subr.bf16.mxu1 %v2673_v53  ;;  %v1039_v4 = vpop.xlane.xlu1 %1038 }
 0x49e   :  { %1221 = vadd.xlane.f32.xlu0 %v1220_v59  ;;  %2676 = vmatpush3.bf16.msra.mxu1 %v2673_v53  ;;  %v1085_v25 = vsub.f32 %v3504_v0, %v1039_v4  ;;  %2856 = vpow2.f32 %v1132_v24 }
 0x49f   :  { %v3676_v2 = vpop.eup %2848 }
 0x4a0   :  { %v1232_v10 = vsel %vm250_vm2, %v3676_v2, 0.0  ;;  %v1136_v33 = vmul.f32 1.442695, %v1085_v25 }
 0x4a1   :  { %v1045_v5 = vpop.xlane.xlu1 %1044 }
 0x4a2   :  { %1227 = vadd.xlane.f32.xlu0 %v1226_v62  ;;  %v1087_v21 = vsub.f32 %v3518_v19, %v1045_v5  ;;  %2858 = vpow2.f32 %v1136_v33 }
 0x4a3   :  { %v3682_v56 = vpop.eup %2850 }
 0x4a4   :  { %v1238_v22 = vsel %vm250_vm2, %v3682_v56, 0.0  ;;  %v3690_v34 = vpop.eup %2852  ;;  %v1140_v35 = vmul.f32 1.442695, %v1087_v21 }
 0x4a5   :  { %v1051_v27 = vpop.xlane.xlu1 %1050  ;;  %v1193_v31 = vsel %vm250_vm2, %v3690_v34, 0.0  ;;  %v3695_v54 = vpop.eup %2854 }
 0x4a6   :  { %1233 = vadd.xlane.f32.xlu0 %v1232_v10  ;;  %v1089_v37 = vsub.f32 %v3532_v29, %v1051_v27  ;;  %2860 = vpow2.f32 %v1140_v35  ;;  %v1205_v19 = vsel %vm250_vm2, %v3695_v54, 0.0 }
 0x4a8   :  { %v1144_v0 = vmul.f32 1.442695, %v1089_v37  ;;  %v3700_v47 = vpop.eup %2856 }
 0x4a9   :  { %v1057_v44 = vpop.xlane.xlu1 %1056  ;;  %v1211_v49 = vsel %vm250_vm2, %v3700_v47, 0.0 }
 0x4aa   :  { %1239 = vadd.xlane.f32.xlu0 %v1238_v22  ;;  %v1091_v38 = vsub.f32 %v3546_v42, %v1057_v44  ;;  %2862 = vpow2.f32 %v1144_v0 }
 0x4ac   :  { %v1148_v50 = vmul.f32 1.442695, %v1091_v38  ;;  %v3705_v51 = vpop.eup %2858 }
 0x4ad   :  { %v1063_v40 = vpop.xlane.xlu1 %1062  ;;  %v1217_v42 = vsel %vm250_vm2, %v3705_v51, 0.0 }
 0x4ae   :  { %v1093_v29 = vsub.f32 %v3560_v58, %v1063_v40  ;;  %2864 = vpow2.f32 %v1148_v50 }
 0x4b0   :  { %v1152_v32 = vmul.f32 1.442695, %v1093_v29  ;;  %v3709_v61 = vpop.eup %2860 }
 0x4b1   :  { %v1223_v53 = vsel %vm250_vm2, %v3709_v61, 0.0 }
 0x4b2   :  { %2866 = vpow2.f32 %v1152_v32 }
 0x4b4   :  { %v3713_v59 = vpop.eup %2862 }
 0x4b5   :  { %v1229_v58 = vsel %vm250_vm2, %v3713_v59, 0.0 }
 0x4b8   :  { %v3717_v15 = vpop.eup %2864 }
 0x4b9   :  { %v1235_v62 = vsel %vm250_vm2, %v3717_v15, 0.0 }
 0x4bb   :  { %1194 = vadd.xlane.f32.xlu1 %v1193_v31 }
 0x4bc   :  { %v3721_v6 = vpop.eup %2866 }
 0x4bd   :  { %v1241_v10 = vsel %vm250_vm2, %v3721_v6, 0.0 }
 0x4bf   :  { %1206 = vadd.xlane.f32.xlu1 %v1205_v19 }
 0x4c3   :  { %1212 = vadd.xlane.f32.xlu1 %v1211_v49 }
 0x4c7   :  { %1218 = vadd.xlane.f32.xlu1 %v1217_v42 }
 0x4cb   :  { %1224 = vadd.xlane.f32.xlu1 %v1223_v53 }
 0x4cf   :  { %1230 = vadd.xlane.f32.xlu1 %v1229_v58 }
 0x4d3   :  { %1236 = vadd.xlane.f32.xlu1 %v1235_v62 }
 0x4d7   :  { %1242 = vadd.xlane.f32.xlu1 %v1241_v10 }
 0x4f9   :  { %v1159_v4 = vpop.xlane.xlu1 %1158 }
 0x4fa   :  { %v1156_v1 = vpop.xlane.xlu0 %1155 }
 0x4fb   :  { %2868 = vrcp.f32 %v1156_v1 }
 0x4fc   :  { %2870 = vrcp.f32 %v1159_v4 }
 0x4fe   :  { %v1162_v24 = vpop.xlane.xlu0 %1161 }
 0x4ff   :  { %v1165_v17 = vpop.xlane.xlu1 %1164  ;;  %2872 = vrcp.f32 %v1162_v24 }
 0x500   :  { %2874 = vrcp.f32 %v1165_v17 }
 0x502   :  { %v1168_v27 = vpop.xlane.xlu0 %1167 }
 0x503   :  { %v1171_v22 = vpop.xlane.xlu1 %1170  ;;  %2876 = vrcp.f32 %v1168_v27 }
 0x504   :  { %2878 = vrcp.f32 %v1171_v22 }
 0x505   :  { %v2869_v5 = vpop.eup %2868 }
 0x506   :  { %v1274_v18 = vmul.f32 %v2869_v5, %v3580_v45  ;;  %v1174_v44 = vpop.xlane.xlu0 %1173  ;;  %v2871_v45 = vpop.eup %2870 }
 0x507   :  { %v1177_v16 = vpop.xlane.xlu1 %1176  ;;  %2880 = vrcp.f32 %v1174_v44  ;;  %v1275_v19 = vmul.f32 %v2871_v45, %v3578_v41 }
 0x508   :  { %2532 = vmatprep.mubr.msk.f32.mxu1 %vm250_vm2, %v1274_v18  ;;  %2882 = vrcp.f32 %v1177_v16 }
 0x509   :  { %v2873_v40 = vpop.eup %2872 }
 0x50a   :  { %v1180_v38 = vpop.xlane.xlu0 %1179  ;;  %v2875_v50 = vpop.eup %2874  ;;  %v1276_v29 = vmul.f32 %v2873_v40, %v3588_v55 }
 0x50b   :  { %v1183_v25 = vpop.xlane.xlu1 %1182  ;;  %2884 = vrcp.f32 %v1180_v38  ;;  %v1277_v32 = vmul.f32 %v2875_v50, %v3590_v63 }
 0x50c   :  { %2886 = vrcp.f32 %v1183_v25 }
 0x50d   :  { %v2877_v49 = vpop.eup %2876 }
 0x50e   :  { %v2879_v42 = vpop.eup %2878  ;;  %v1278_v14 = vmul.f32 %v2877_v49, %v3598_v13 }
 0x50f   :  { %v1189_v33 = vpop.xlane.xlu1 %1188  ;;  %v1279_v41 = vmul.f32 %v2879_v42, %v3600_v20 }
 0x511   :  { %v2881_v58 = vpop.eup %2880 }
 0x512   :  { %v1192_v53 = vpop.xlane.xlu0 %1191  ;;  %v2883_v55 = vpop.eup %2882  ;;  %v1280_v62 = vmul.f32 %v2881_v58, %v3609_v28 }
 0x513   :  { %v1186_v21 = vpop.xlane.xlu1 %1185  ;;  %v1281_v63 = vmul.f32 %v2883_v55, %v3611_v9 }
 0x514   :  { %2888 = vrcp.f32 %v1186_v21 }
 0x515   :  { %2890 = vrcp.f32 %v1189_v33  ;;  %v2885_v10 = vpop.eup %2884 }
 0x516   :  { %2892 = vrcp.f32 %v1192_v53  ;;  %v2887_v13 = vpop.eup %2886  ;;  %v1282_v4 = vmul.f32 %v2885_v10, %v3619_v39 }
 0x517   :  { %v2797_v35 = vpop.permute.xlu1 %2796  ;;  %v1283_v20 = vmul.f32 %v2887_v13, %v3621_v43  ;;  %v1201_v5 = vpop.xlane.xlu0 %1200 }
 0x518   :  { %v2799_v37 = vunpack.i.h.bf16 %v2797_v35  ;;  %v2798_v31 = vunpack.i.l.bf16 %v2797_v35 }
 0x51a   :  { %v2677_v0 = vpack.c.bf16 %v2799_v37, %v2798_v31 }
 0x51b   :  { %v1198_v18 = vpop.xlane.xlu0 %1197 }
 0x51c   :  { %2679 = vmatprep.subr.msk.bf16.mxu1 %vm3109_vm5, %v2677_v0  ;;  %2894 = vrcp.f32 %v1198_v18  ;;  %v2938_v18 = vld [vmem:[%s4078_s9 + $0x18] sm:$0xff] }
 0x51d   :  { %2682 = vmatpush3.bf16.msk.msra.mxu1 %vm3109_vm5, %v2677_v0 }
 0x51e   :  { %v2889_v1 = vpop.eup %2888 }
 0x51f   :  { %v2891_v17 = vpop.eup %2890  ;;  %v1284_v28 = vmul.f32 %v2889_v1, %v3633_v60  ;;  %v1204_v16 = vpop.xlane.xlu0 %1203 }
 0x520   :  { %2533 = vmatmul.mubr.msk.f32.vlgmr.msra.gmra.mrb[30].mxu1 %vm250_vm2, %v1275_v19  ;;  %v2893_v22 = vpop.eup %2892  ;;  %v1285_v9 = vmul.f32 %v2891_v17, %v3628_v36 }
 0x521   :  { %2535 = vmatprep.mubr.msk.f32.mxu1 %vm250_vm2, %v1276_v29  ;;  %v1286_v39 = vmul.f32 %v2893_v22, %v3635_v46 }
 0x523   :  { %v1210_v43 = vpop.xlane.xlu0 %1209 }
 0x524   :  { %2536 = vmatmul.mubr.msk.f32.gmra.mrb[32].mxu1 %vm250_vm2, %v1277_v32 }
 0x525   :  { %2538 = vmatprep.mubr.msk.f32.mxu1 %vm250_vm2, %v1278_v14 }
 0x526   :  { %v2895_v33 = vpop.eup %2894 }
 0x527   :  { %v1216_v60 = vpop.xlane.xlu0 %1215  ;;  %v1288_v31 = vmul.f32 %v2895_v33, %v3647_v23 }
 0x528   :  { %2539 = vmatmul.mubr.msk.f32.gmra.mrb[34].mxu1 %vm250_vm2, %v1279_v41 }
 0x529   :  { %2541 = vmatprep.mubr.msk.f32.mxu1 %vm250_vm2, %v1280_v62 }
 0x52b   :  { %v1222_v27 = vpop.xlane.xlu0 %1221 }
 0x52c   :  { %2542 = vmatmul.mubr.msk.f32.gmra.mrb[36].mxu1 %vm250_vm2, %v1281_v63 }
 0x52d   :  { %2544 = vmatprep.mubr.msk.f32.mxu1 %vm250_vm2, %v1282_v4 }
 0x52f   :  { %v1228_v37 = vpop.xlane.xlu0 %1227 }
 0x530   :  { %2545 = vmatmul.mubr.msk.f32.gmra.mrb[38].mxu1 %vm250_vm2, %v1283_v20 }
 0x531   :  { %2547 = vmatprep.mubr.msk.f32.mxu1 %vm250_vm2, %v1284_v28 }
 0x534   :  { %2548 = vmatmul.mubr.msk.f32.gmra.mrb[40].mxu1 %vm250_vm2, %v1285_v9 }
 0x535   :  { %2550 = vmatprep.mubr.msk.f32.mxu1 %vm250_vm2, %v1286_v39 }
 0x548   :  { %v1195_v24 = vpop.xlane.xlu1 %1194 }
 0x549   :  { %2896 = vrcp.f32 %v1195_v24  ;;  %v2939_v24 = vld [vmem:[%s4078_s9 + $0x10] sm:$0xff] }
 0x54a   :  { %2898 = vrcp.f32 %v1201_v5 }
 0x54b   :  { %2900 = vrcp.f32 %v1204_v16 }
 0x54c   :  { %v1207_v25 = vpop.xlane.xlu1 %1206 }
 0x54d   :  { %2902 = vrcp.f32 %v1207_v25 }
 0x54e   :  { %2904 = vrcp.f32 %v1210_v43 }
 0x550   :  { %v1213_v36 = vpop.xlane.xlu1 %1212 }
 0x551   :  { %2906 = vrcp.f32 %v1213_v36  ;;  %v2940_v36 = vld [vmem:[%s4078_s9 + $0x28] sm:$0xff] }
 0x552   :  { %2908 = vrcp.f32 %v1216_v60 }
 0x553   :  { %v2897_v46 = vpop.eup %2896 }
 0x554   :  { %v1219_v21 = vpop.xlane.xlu1 %1218  ;;  %v1287_v44 = vmul.f32 %v2897_v46, %v3690_v34  ;;  %v2899_v35 = vpop.eup %2898 }
 0x555   :  { %v2901_v0 = vpop.eup %2900  ;;  %2910 = vrcp.f32 %v1219_v21  ;;  %v1289_v38 = vmul.f32 %v2899_v35, %v3642_v11  ;;  %v1234_v34 = vpop.xlane.xlu0 %1233  ;;  %v2941_v21 = vld [vmem:[%s4078_s9 + $0x20] sm:$0xff] }
 0x556   :  { %2551 = vmatmul.mubr.msk.f32.gmra.mrb[42].mxu1 %vm250_vm2, %v1287_v44  ;;  %2912 = vrcp.f32 %v1222_v27  ;;  %v1290_v19 = vmul.f32 %v2901_v0, %v3652_v30 }
 0x557   :  { %2553 = vmatprep.mubr.msk.f32.mxu1 %vm250_vm2, %v1288_v31  ;;  %v2903_v40 = vpop.eup %2902  ;;  %v2942_v31 = vld [vmem:[%s4078_s9 + $0x38] sm:$0xff] }
 0x558   :  { %v1225_v45 = vpop.xlane.xlu1 %1224  ;;  %v2905_v50 = vpop.eup %2904  ;;  %v1291_v29 = vmul.f32 %v2903_v40, %v3695_v54 }
 0x559   :  { %2914 = vrcp.f32 %v1225_v45  ;;  %v1292_v32 = vmul.f32 %v2905_v50, %v3657_v26  ;;  %v1240_v14 = vpop.xlane.xlu0 %1239 }
 0x55a   :  { %2554 = vmatmul.mubr.msk.f32.gmra.mrb[44].mxu1 %vm250_vm2, %v1289_v38  ;;  %2916 = vrcp.f32 %v1228_v37  ;;  %v2943_v38 = vld [vmem:[%s4078_s9 + $0x30] sm:$0xff] }
 0x55b   :  { %2556 = vmatprep.mubr.msk.f32.mxu1 %vm250_vm2, %v1290_v19  ;;  %v2907_v49 = vpop.eup %2906 }
 0x55c   :  { %v1231_v23 = vpop.xlane.xlu1 %1230  ;;  %v2909_v42 = vpop.eup %2908  ;;  %v1293_v30 = vmul.f32 %v2907_v49, %v3700_v47  ;;  %v2945_v49 = vld [vmem:[%s4078_s9 + $0x40] sm:$0xff] }
 0x55d   :  { %2918 = vrcp.f32 %v1231_v23  ;;  %v1294_v58 = vmul.f32 %v2909_v42, %v3662_v48 }
 0x55e   :  { %2557 = vmatmul.mubr.msk.f32.gmra.mrb[46].mxu1 %vm250_vm2, %v1291_v29  ;;  %2920 = vrcp.f32 %v1234_v34  ;;  %v2944_v34 = vld [vmem:[%s4078_s9 + $0x48] sm:$0xff] }
 0x55f   :  { %2559 = vmatprep.mubr.msk.f32.mxu1 %vm250_vm2, %v1292_v32  ;;  %v2911_v53 = vpop.eup %2910 }
 0x560   :  { %v1237_v11 = vpop.xlane.xlu1 %1236  ;;  %v2913_v41 = vpop.eup %2912  ;;  %v1295_v54 = vmul.f32 %v2911_v53, %v3705_v51 }
 0x561   :  { %2922 = vrcp.f32 %v1237_v11  ;;  %v1296_v62 = vmul.f32 %v2913_v41, %v3668_v52 }
 0x562   :  { %2560 = vmatmul.mubr.msk.f32.gmra.mrb[48].mxu1 %vm250_vm2, %v1293_v30  ;;  %2924 = vrcp.f32 %v1240_v14  ;;  %v2946_v30 = vld [vmem:[%s4078_s9 + $0x58] sm:$0xff] }
 0x563   :  { %2562 = vmatprep.mubr.msk.f32.mxu1 %vm250_vm2, %v1294_v58  ;;  %v2915_v55 = vpop.eup %2914  ;;  %v2947_v58 = vld [vmem:[%s4078_s9 + $0x50] sm:$0xff] }
 0x564   :  { %v1243_v26 = vpop.xlane.xlu1 %1242  ;;  %v2917_v10 = vpop.eup %2916  ;;  %v1297_v48 = vmul.f32 %v2915_v55, %v3709_v61  ;;  %v2948_v55 = vld [vmem:[%s4078_s9 + $0x68] sm:$0xff] }
 0x565   :  { %2926 = vrcp.f32 %v1243_v26  ;;  %v1298_v63 = vmul.f32 %v2917_v10, %v3672_v57 }
 0x566   :  { %2563 = vmatmul.mubr.msk.f32.gmra.mrb[50].mxu1 %vm250_vm2, %v1295_v54 }
 0x567   :  { %2565 = vmatprep.mubr.msk.f32.mxu1 %vm250_vm2, %v1296_v62  ;;  %v2919_v47 = vpop.eup %2918 }
 0x568   :  { %v2921_v13 = vpop.eup %2920  ;;  %v1299_v51 = vmul.f32 %v2919_v47, %v3713_v59  ;;  %v2969_v59 = vmov 0.0|0.0  }
 0x569   :  { %v1300_v52 = vmul.f32 %v2921_v13, %v3676_v2  ;;  %2683 = vmatprep.subr.bf16.mxu0 %v2969_v59  ;;  %v1623_v2 = vld [vmem:[%s4080_s11 + $0x8] sm:$0xff] }
 0x56a   :  { %2566 = vmatmul.mubr.msk.f32.gmra.mrb[52].mxu1 %vm250_vm2, %v1297_v48  ;;  %2245 = vmatprep.mubr.msk.f32.mxu0 %vm1660_vm7, %v1623_v2  ;;  %v2949_v48 = vld [vmem:[%s4078_s9 + $0x60] sm:$0xff] }
 0x56b   :  { %2568 = vmatprep.mubr.msk.f32.mxu1 %vm250_vm2, %v1298_v63  ;;  %v2923_v4 = vpop.eup %2922 }
 0x56c   :  { %v2925_v1 = vpop.eup %2924  ;;  %v1301_v61 = vmul.f32 %v2923_v4, %v3717_v15 }
 0x56d   :  { %v1302_v57 = vmul.f32 %v2925_v1, %v3682_v56  ;;  %v2936_v56 = vld [vmem:[%s4078_s9 + $0x8] sm:$0xff]  ;;  %v2951_v1 = vld [vmem:[%s4078_s9 + $0x70] sm:$0xff] }
 0x56e   :  { %2569 = vmatmul.mubr.msk.f32.gmra.mrb[54].mxu1 %vm250_vm2, %v1299_v51  ;;  %v2950_v51 = vld [vmem:[%s4078_s9 + $0x78] sm:$0xff] }
 0x56f   :  { %2571 = vmatprep.mubr.msk.f32.mxu1 %vm250_vm2, %v1300_v52  ;;  %v2927_v20 = vpop.eup %2926 }
 0x570   :  { %v1303_v17 = vmul.f32 %v2927_v20, %v3721_v6  ;;  %v2937_v6 = vld [vmem:[%s4078_s9] sm:$0xff] }
 0x572   :  { %2572 = vmatmul.mubr.msk.f32.gmra.mrb[56].mxu1 %vm250_vm2, %v1301_v61 }
 0x573   :  { %2574 = vmatprep.mubr.msk.f32.mxu1 %vm250_vm2, %v1302_v57 }
 0x576   :  { %2575 = vmatmul.mubr.msk.f32.gmra.mrb[58].mxu1 %vm250_vm2, %v1303_v17  ;;  %v2952_v17 = vld [vmem:[%s4078_s9 + $0x88] sm:$0xff] }
 0x5f3   :  { %v2534_v15 = vpop.f32.mrb[30].mxu1 }
 0x5f4   :  { %v1631_v28 = vmul.f32 %v2936_v56, %v2534_v15  ;;  %v1473_v22 = vpop.f32.mrb[31].mxu1  ;;  %v2953_v56 = vld [vmem:[%s4078_s9 + $0x80] sm:$0xff] }
 0x5f5   :  { %v1630_v5 = vmul.f32 %v2937_v6, %v1473_v22 }
 0x5f7   :  { %v2684_v9 = vpack.c.bf16 %v1631_v28, %v1630_v5  ;;  %v2537_v39 = vpop.f32.mrb[32].mxu1  ;;  %v2954_v5 = vld [vmem:[%s4078_s9 + $0x98] sm:$0xff] }
 0x5f8   :  { %v1633_v16 = vmul.f32 %v2938_v18, %v2537_v39  ;;  %v1483_v43 = vpop.f32.mrb[33].mxu1  ;;  %v2955_v18 = vld [vmem:[%s4078_s9 + $0x90] sm:$0xff] }
 0x5f9   :  { %v1632_v60 = vmul.f32 %v2939_v24, %v1483_v43  ;;  %2685 = vmatpush1.bf16.msra.mxu0 %v2684_v9 }
 0x5fa   :  { %2686 = vmatprep.subr.bf16.mxu0 %v2969_v59 }
 0x5fb   :  { %v2687_v25 = vpack.c.bf16 %v1633_v16, %v1632_v60  ;;  %v2540_v27 = vpop.f32.mrb[34].mxu1  ;;  %v2956_v60 = vld [vmem:[%s4078_s9 + $0xa8] sm:$0xff] }
 0x5fc   :  { %v1635_v33 = vmul.f32 %v2940_v36, %v2540_v27  ;;  %v1493_v46 = vpop.f32.mrb[35].mxu1  ;;  %v2957_v36 = vld [vmem:[%s4078_s9 + $0xa0] sm:$0xff] }
 0x5fd   :  { %v1634_v44 = vmul.f32 %v2941_v21, %v1493_v46  ;;  %2688 = vmatpush1.bf16.msra.mxu0 %v2687_v25 }
 0x5fe   :  { %2689 = vmatprep.subr.bf16.mxu0 %v2969_v59 }
 0x5ff   :  { %v2690_v35 = vpack.c.bf16 %v1635_v33, %v1634_v44  ;;  %v2543_v37 = vpop.f32.mrb[36].mxu1  ;;  %v2958_v44 = vld [vmem:[%s4078_s9 + $0xb8] sm:$0xff] }
 0x600   :  { %v1637_v0 = vmul.f32 %v2942_v31, %v2543_v37  ;;  %v1503_v45 = vpop.f32.mrb[37].mxu1  ;;  %v2959_v31 = vld [vmem:[%s4078_s9 + $0xb0] sm:$0xff] }
 0x601   :  { %v1636_v40 = vmul.f32 %v2943_v38, %v1503_v45  ;;  %2691 = vmatpush1.bf16.msra.mxu0 %v2690_v35 }
 0x602   :  { %2692 = vmatprep.subr.bf16.mxu0 %v2969_v59 }
 0x603   :  { %v2693_v19 = vpack.c.bf16 %v1637_v0, %v1636_v40  ;;  %v2546_v50 = vpop.f32.mrb[38].mxu1  ;;  %v2960_v40 = vld [vmem:[%s4078_s9 + $0xc8] sm:$0xff] }
 0x604   :  { %v1639_v23 = vmul.f32 %v2944_v34, %v2546_v50  ;;  %v1513_v29 = vpop.f32.mrb[39].mxu1  ;;  %v2961_v34 = vld [vmem:[%s4078_s9 + $0xc0] sm:$0xff] }
 0x605   :  { %v1638_v32 = vmul.f32 %v2945_v49, %v1513_v29  ;;  %2694 = vmatpush1.bf16.msra.mxu0 %v2693_v19 }
 0x606   :  { %2695 = vmatprep.subr.bf16.mxu0 %v2969_v59 }
 0x607   :  { %v2696_v42 = vpack.c.bf16 %v1639_v23, %v1638_v32  ;;  %v2549_v11 = vpop.f32.mrb[40].mxu1  ;;  %v2962_v32 = vld [vmem:[%s4078_s9 + $0xd8] sm:$0xff] }
 0x608   :  { %v1641_v53 = vmul.f32 %v2946_v30, %v2549_v11  ;;  %v1523_v14 = vpop.f32.mrb[41].mxu1  ;;  %v2963_v30 = vld [vmem:[%s4078_s9 + $0xd0] sm:$0xff] }
 0x609   :  { %v1640_v41 = vmul.f32 %v2947_v58, %v1523_v14  ;;  %2697 = vmatpush1.bf16.msra.mxu0 %v2696_v42 }
 0x60a   :  { %2698 = vmatprep.subr.bf16.mxu0 %v2969_v59 }
 0x60b   :  { %v2699_v26 = vpack.c.bf16 %v1641_v53, %v1640_v41  ;;  %v1758_v41 = vld [vmem:[%s4081_s4] sm:$0xff] }
 0x60d   :  { %2700 = vmatpush1.bf16.msra.mxu0 %v2699_v26  ;;  %v1759_v26 = vld [vmem:[%s4081_s4 + $0x8] sm:$0xff] }
 0x60e   :  { %2701 = vmatprep.subr.bf16.mxu0 %v2969_v59 }
 0x629   :  { %v2552_v54 = vpop.f32.mrb[42].mxu1 }
 0x62a   :  { %v1643_v62 = vmul.f32 %v2948_v55, %v2552_v54  ;;  %v1533_v10 = vpop.f32.mrb[43].mxu1  ;;  %v2964_v54 = vld [vmem:[%s4078_s9 + $0xe8] sm:$0xff] }
 0x62b   :  { %v1642_v47 = vmul.f32 %v2949_v48, %v1533_v10  ;;  %v2965_v10 = vld [vmem:[%s4078_s9 + $0xe0] sm:$0xff] }
 0x62d   :  { %v2702_v63 = vpack.c.bf16 %v1643_v62, %v1642_v47  ;;  %v2555_v13 = vpop.f32.mrb[44].mxu1  ;;  %v2728_v47 = vpack.c.bf16 %v1759_v26, %v1758_v41  ;;  %v2031_v26 = vld [vmem:[%s4083_s7] sm:$0xff] }
 0x62e   :  { %v1645_v4 = vmul.f32 %v2950_v51, %v2555_v13  ;;  %v1543_v52 = vpop.f32.mrb[45].mxu1  ;;  %v1622_v13 = vld [vmem:[%s4080_s11] sm:$0xff]  ;;  %v1625_v51 = vld [vmem:[%s4080_s11 + $0x18] sm:$0xff] }
 0x62f   :  { %v1644_v61 = vmul.f32 %v2951_v1, %v1543_v52  ;;  %2703 = vmatpush1.bf16.msra.mxu0 %v2702_v63  ;;  %v1626_v52 = vld [vmem:[%s4080_s11 + $0x20] sm:$0xff]  ;;  %v1629_v1 = vld [vmem:[%s4080_s11 + $0x38] sm:$0x3f] }
 0x630   :  { %2704 = vmatprep.subr.bf16.mxu0 %v2969_v59 }
 0x631   :  { %v2705_v20 = vpack.c.bf16 %v1645_v4, %v1644_v61  ;;  %v2558_v57 = vpop.f32.mrb[46].mxu1  ;;  %v1624_v4 = vld [vmem:[%s4080_s11 + $0x10] sm:$0xff] }
 0x632   :  { %v1647_v2 = vmul.f32 %v2952_v17, %v2558_v57  ;;  %v1553_v15 = vpop.f32.mrb[47].mxu1  ;;  %v1628_v61 = vld [vmem:[%s4080_s11 + $0x30] sm:$0x3f]  ;;  %v1761_v57 = vld [vmem:[%s4081_s4 + $0x18] sm:$0xff] }
 0x633   :  { %v1646_v28 = vmul.f32 %v2953_v56, %v1553_v15  ;;  %2706 = vmatpush1.bf16.msra.mxu0 %v2705_v20  ;;  %v1760_v20 = vld [vmem:[%s4081_s4 + $0x10] sm:$0xff] }
 0x634   :  { %2707 = vmatprep.subr.bf16.mxu0 %v2969_v59  ;;  %v2732_v17 = vpack.c.bf16 %v1761_v57, %v1760_v20  ;;  %v2041_v20 = vld [vmem:[%s4083_s7 + $0x50] sm:$0xff]  ;;  %v2042_v57 = vld [vmem:[%s4083_s7 + $0x58] sm:$0xff] }
 0x635   :  { %v2708_v22 = vpack.c.bf16 %v1647_v2, %v1646_v28  ;;  %v2561_v6 = vpop.f32.mrb[48].mxu1 }
 0x636   :  { %v1649_v9 = vmul.f32 %v2954_v5, %v2561_v6  ;;  %v1563_v39 = vpop.f32.mrb[49].mxu1 }
 0x637   :  { %v1648_v16 = vmul.f32 %v2955_v18, %v1563_v39  ;;  %2709 = vmatpush1.bf16.msra.mxu0 %v2708_v22 }
 0x638   :  { %2710 = vmatprep.subr.bf16.mxu0 %v2969_v59 }
 0x639   :  { %v2711_v43 = vpack.c.bf16 %v1649_v9, %v1648_v16  ;;  %v2564_v24 = vpop.f32.mrb[50].mxu1 }
 0x63a   :  { %v1651_v25 = vmul.f32 %v2956_v60, %v2564_v24  ;;  %v1573_v27 = vpop.f32.mrb[51].mxu1 }
 0x63b   :  { %v1650_v33 = vmul.f32 %v2957_v36, %v1573_v27  ;;  %2712 = vmatpush1.bf16.msra.mxu0 %v2711_v43 }
 0x63c   :  { %2713 = vmatprep.subr.bf16.mxu0 %v2969_v59 }
 0x63d   :  { %v2714_v46 = vpack.c.bf16 %v1651_v25, %v1650_v33  ;;  %v2567_v21 = vpop.f32.mrb[52].mxu1 }
 0x63e   :  { %v1653_v35 = vmul.f32 %v2958_v44, %v2567_v21  ;;  %v1583_v37 = vpop.f32.mrb[53].mxu1 }
 0x63f   :  { %v1652_v0 = vmul.f32 %v2959_v31, %v1583_v37  ;;  %2715 = vmatpush1.bf16.msra.mxu0 %v2714_v46 }
 0x640   :  { %2716 = vmatprep.subr.bf16.mxu0 %v2969_v59 }
 0x641   :  { %v2717_v45 = vpack.c.bf16 %v1653_v35, %v1652_v0  ;;  %v2570_v38 = vpop.f32.mrb[54].mxu1 }
 0x642   :  { %v1655_v19 = vmul.f32 %v2960_v40, %v2570_v38  ;;  %v1593_v50 = vpop.f32.mrb[55].mxu1 }
 0x643   :  { %v1654_v23 = vmul.f32 %v2961_v34, %v1593_v50  ;;  %2718 = vmatpush1.bf16.msra.mxu0 %v2717_v45 }
 0x644   :  { %2719 = vmatprep.subr.bf16.mxu0 %v2969_v59 }
 0x645   :  { %v2720_v29 = vpack.c.bf16 %v1655_v19, %v1654_v23  ;;  %v2573_v49 = vpop.f32.mrb[56].mxu1 }
 0x646   :  { %v1657_v42 = vmul.f32 %v2962_v32, %v2573_v49  ;;  %v1603_v11 = vpop.f32.mrb[57].mxu1 }
 0x647   :  { %v1656_v53 = vmul.f32 %v2963_v30, %v1603_v11  ;;  %2721 = vmatpush1.bf16.msra.mxu0 %v2720_v29  ;;  %v1926_v11 = vld [vmem:[%s4082_s6] sm:$0xff]  ;;  %v1927_v30 = vld [vmem:[%s4082_s6 + $0x8] sm:$0xff] }
 0x648   :  { %2722 = vmatprep.subr.bf16.mxu0 %v2969_v59 }
 0x649   :  { %v2723_v14 = vpack.c.bf16 %v1657_v42, %v1656_v53  ;;  %v2576_v58 = vpop.f32.mrb[58].mxu1  ;;  %v2736_v53 = vpack.c.bf16 %v1927_v30, %v1926_v11 }
 0x64a   :  { %v1659_v55 = vmul.f32 %v2964_v54, %v2576_v58  ;;  %v1613_v62 = vpop.f32.mrb[59].mxu1  ;;  %v1929_v58 = vld [vmem:[%s4082_s6 + $0x18] sm:$0xff]  ;;  %v2032_v54 = vld [vmem:[%s4083_s7 + $0x8] sm:$0xff] }
 0x64b   :  { %v1658_v48 = vmul.f32 %v2965_v10, %v1613_v62  ;;  %2724 = vmatpush1.bf16.msra.mxu0 %v2723_v14  ;;  %v1928_v14 = vld [vmem:[%s4082_s6 + $0x10] sm:$0xff]  ;;  %v2744_v62 = vpack.c.bf16 %v2032_v54, %v2031_v26  ;;  %v2034_v10 = vld [vmem:[%s4083_s7 + $0x18] sm:$0xff] }
 0x64c   :  { %2725 = vmatprep.subr.bf16.mxu0 %v2969_v59  ;;  %v1627_v59 = vld [vmem:[%s4080_s11 + $0x28] sm:$0xff]  ;;  %v2740_v41 = vpack.c.bf16 %v1929_v58, %v1928_v14 }
 0x64d   :  { %v2726_v63 = vpack.c.bf16 %v1659_v55, %v1658_v48  ;;  %v2033_v55 = vld [vmem:[%s4083_s7 + $0x10] sm:$0xff]  ;;  %2745 = vmatprep.subr.bf16.mxu1 %v2744_v62 }
 0x64e   :  { %v2748_v48 = vpack.c.bf16 %v2034_v10, %v2033_v55  ;;  %2747 = vmatpush3.bf16.msra.mxu1 %v2744_v62 }
 0x64f   :  { %2727 = vmatpush1.bf16.msra.mxu0 %v2726_v63  ;;  %v2036_v63 = vld [vmem:[%s4083_s7 + $0x28] sm:$0xff] }
 0x650   :  { %2729 = vmatprep.subr.bf16.mxu0 %v2728_v47  ;;  %2749 = vmatprep.subr.bf16.mxu1 %v2748_v48 }
 0x652   :  { %1738 = vmatmul.mubr.f32.vlgmr.msra.gmra.mrb[34].mxu0 %v1622_v13  ;;  %2751 = vmatpush3.bf16.msra.mxu1 %v2748_v48 }
 0x653   :  { %2246 = vmatprep.mubr.msk.f32.mxu0 %vm1660_vm7, %v1625_v51  ;;  %2731 = vmatpush3.bf16.msra.mxu0 %v2728_v47  ;;  %v2035_v47 = vld [vmem:[%s4083_s7 + $0x20] sm:$0xff]  ;;  %v2037_v51 = vld [vmem:[%s4083_s7 + $0x30] sm:$0xff] }
 0x654   :  { %2733 = vmatprep.subr.bf16.mxu0 %v2732_v17  ;;  %v2752_v13 = vpack.c.bf16 %v2036_v63, %v2035_v47 }
 0x656   :  { %1743 = vmatmul.mubr.f32.gmra.mrb[36].mxu0 %v1624_v4  ;;  %v2038_v4 = vld [vmem:[%s4083_s7 + $0x38] sm:$0xff]  ;;  %2753 = vmatprep.subr.bf16.mxu1 %v2752_v13 }
 0x657   :  { %2247 = vmatprep.mubr.msk.f32.mxu0 %vm1660_vm7, %v1627_v59  ;;  %2735 = vmatpush3.bf16.msra.mxu0 %v2732_v17  ;;  %v2756_v59 = vpack.c.bf16 %v2038_v4, %v2037_v51  ;;  %v2764_v17 = vpack.c.bf16 %v2042_v57, %v2041_v20 }
 0x658   :  { %2737 = vmatprep.subr.bf16.mxu0 %v2736_v53  ;;  %2755 = vmatpush3.bf16.msra.mxu1 %v2752_v13 }
 0x659   :  { %2757 = vmatprep.subr.bf16.mxu1 %v2756_v59 }
 0x65a   :  { %1748 = vmatmul.mubr.f32.gmra.mrb[38].mxu0 %v1626_v52  ;;  %v2039_v52 = vld [vmem:[%s4083_s7 + $0x40] sm:$0xff] }
 0x65b   :  { %2248 = vmatprep.mubr.msk.f32.mxu0 %vm1660_vm7, %v1629_v1  ;;  %v2040_v1 = vld [vmem:[%s4083_s7 + $0x48] sm:$0xff] }
 0x65c   :  { %2759 = vmatpush3.bf16.msra.mxu1 %v2756_v59 }
 0x65e   :  { %1753 = vmatmul.mubr.f32.gmra.mrb[40].mxu0 %v1628_v61  ;;  %v2760_v61 = vpack.c.bf16 %v2040_v1, %v2039_v52 }
 0x660   :  { %2761 = vmatprep.subr.bf16.mxu1 %v2760_v61 }
 0x661   :  { %2763 = vmatpush3.bf16.msra.mxu1 %v2760_v61 }
 0x662   :  { %2765 = vmatprep.subr.bf16.mxu1 %v2764_v17 }
 0x665   :  { %2767 = vmatpush3.bf16.msra.mxu1 %v2764_v17 }
 0x725   :  { %v1739_v2 = vpop.f32.mrb[34].mxu0 }
 0x726   :  { %v1741_v15 = vpop.f32.mrb[35].mxu0  ;;  %2585 = vmatprep.mubr.msk.f32.mxu0 %vm54_vm0, %v1739_v2  ;;  %v2043_v2 = vld [vmem:[%s4083_s7 + $0x60] sm:$0xff] }
 0x727   :  { %v2044_v15 = vld [vmem:[%s4083_s7 + $0x68] sm:$0xff] }
 0x729   :  { %v1744_v56 = vpop.f32.mrb[36].mxu0 }
 0x72a   :  { %v1746_v28 = vpop.f32.mrb[37].mxu0  ;;  %2586 = vmatmul.mubr.msk.f32.vlgmr.msra.gmra.mrb[42].mxu0 %vm54_vm0, %v1744_v56  ;;  %v2768_v56 = vpack.c.bf16 %v2044_v15, %v2043_v2 }
 0x72b   :  { %2739 = vmatpush3.bf16.msra.mxu0 %v2736_v53 }
 0x72c   :  { %2741 = vmatprep.subr.bf16.mxu0 %v2740_v41  ;;  %2769 = vmatprep.subr.bf16.mxu1 %v2768_v56 }
 0x72d   :  { %v1749_v22 = vpop.f32.mrb[38].mxu0  ;;  %2771 = vmatpush3.bf16.msra.mxu1 %v2768_v56 }
 0x72e   :  { %v1751_v6 = vpop.f32.mrb[39].mxu0  ;;  %2588 = vmatprep.mubr.msk.f32.mxu0 %vm54_vm0, %v1749_v22 }
 0x72f   :  { %2743 = vmatpush3.bf16.msra.mxu0 %v2740_v41 }
 0x731   :  { %v1754_v5 = vpop.f32.mrb[40].mxu0 }
 0x732   :  { %v1756_v9 = vpop.f32.mrb[41].mxu0  ;;  %2589 = vmatmul.mubr.msk.f32.gmra.mrb[44].mxu0 %vm54_vm0, %v1754_v5 }
 0x7fd   :  { %v2587_v39 = vpop.f32.mrb[42].mxu0 }
 0x7fe   :  { %v3939_v18 = vadd.f32 %v2587_v39, %v3057_v8  ;;  %v1840_v16 = vpop.f32.mrb[43].mxu0 }
 0x7ff   :  { %v3942_v43 = vadd.f32 %v1840_v16, %v3044_v3 }
 0x800   :  { %v1867_v24 = vsel %vm54_vm0, %v3939_v18, 0.0 }
 0x801   :  { %1868 = vadd.xlane.f32.xlu1 %v1867_v24  ;;  %v1864_v60 = vsel %vm54_vm0, %v3942_v43, 0.0 }
 0x802   :  { %1865 = vadd.xlane.f32.xlu0 %v1864_v60 }
 0x805   :  { %v2590_v25 = vpop.f32.mrb[44].mxu0 }
 0x806   :  { %v3949_v27 = vadd.f32 %v2590_v25, %v3067_v12  ;;  %v1850_v36 = vpop.f32.mrb[45].mxu0 }
 0x807   :  { %v3952_v8 = vadd.f32 %v1850_v36, %v3055_v7 }
 0x808   :  { %v1873_v3 = vsel %vm64_vm1, %v3949_v27, 0.0 }
 0x809   :  { %1874 = vadd.xlane.f32.xlu1 %v1873_v3  ;;  %v1870_v33 = vsel %vm54_vm0, %v3952_v8, 0.0 }
 0x80a   :  { %1871 = vadd.xlane.f32.xlu0 %v1870_v33 }
 0x88e   :  { %v1869_v46 = vpop.xlane.xlu1 %1868 }
 0x88f   :  { %v1877_v21 = vmul.f32 0.03125, %v1869_v46  ;;  %v1866_v44 = vpop.xlane.xlu0 %1865 }
 0x890   :  { %v1876_v35 = vmul.f32 0.03125, %v1866_v44  ;;  %v2253_v44 = vld [vmem:[%s4084_s5] ss:$0 sm:$0xff] }
 0x891   :  { %v3959_v37 = vsub.f32 %v3939_v18, %v1877_v21 }
 0x892   :  { %v3962_v12 = vsub.f32 %v3942_v43, %v1876_v35 }
 0x893   :  { %v1885_v7 = vmul.f32 %v3959_v37, %v3959_v37 }
 0x894   :  { %v1884_v31 = vmul.f32 %v3962_v12, %v3962_v12 }
 0x895   :  { %v1891_v0 = vsel %vm54_vm0, %v1885_v7, 0.0 }
 0x896   :  { %1892 = vadd.xlane.f32.xlu1 %v1891_v0  ;;  %v1875_v45 = vpop.xlane.xlu1 %1874  ;;  %v1888_v38 = vsel %vm54_vm0, %v1884_v31, 0.0 }
 0x897   :  { %v1879_v40 = vmul.f32 0.03125, %v1875_v45  ;;  %1889 = vadd.xlane.f32.xlu0 %v1888_v38  ;;  %v1872_v19 = vpop.xlane.xlu0 %1871 }
 0x898   :  { %v1878_v50 = vmul.f32 0.03125, %v1872_v19 }
 0x899   :  { %v3971_v34 = vsub.f32 %v3949_v27, %v1879_v40 }
 0x89a   :  { %v3974_v23 = vsub.f32 %v3952_v8, %v1878_v50  ;;  %v2046_v50 = vld [vmem:[%s4083_s7 + $0x78] sm:$0xff] }
 0x89b   :  { %v1887_v29 = vmul.f32 %v3971_v34, %v3971_v34 }
 0x89c   :  { %v1886_v49 = vmul.f32 %v3974_v23, %v3974_v23 }
 0x89d   :  { %v1897_v32 = vsel %vm64_vm1, %v1887_v29, 0.0 }
 0x89e   :  { %1898 = vadd.xlane.f32.xlu1 %v1897_v32  ;;  %v1894_v42 = vsel %vm54_vm0, %v1886_v49, 0.0 }
 0x89f   :  { %1895 = vadd.xlane.f32.xlu0 %v1894_v42 }
 0x923   :  { %v1893_v28 = vpop.xlane.xlu1 %1892 }
 0x924   :  { %v1901_v22 = vmul.f32 0.03125, %v1893_v28  ;;  %v1890_v6 = vpop.xlane.xlu0 %1889 }
 0x925   :  { %v1900_v5 = vmul.f32 0.03125, %v1890_v6 }
 0x926   :  { %v1905_v9 = vadd.f32 1e-05, %v1901_v22 }
 0x927   :  { %v1904_v39 = vadd.f32 1e-05, %v1900_v5 }
 0x928   :  { %2928 = vrsqrt.f32 %v1905_v9 }
 0x929   :  { %2930 = vrsqrt.f32 %v1904_v39 }
 0x92b   :  { %v1899_v16 = vpop.xlane.xlu1 %1898 }
 0x92c   :  { %v1903_v24 = vmul.f32 0.03125, %v1899_v16  ;;  %v1896_v60 = vpop.xlane.xlu0 %1895 }
 0x92d   :  { %v1902_v25 = vmul.f32 0.03125, %v1896_v60 }
 0x92e   :  { %v1907_v36 = vadd.f32 1e-05, %v1903_v24 }
 0x92f   :  { %v1906_v3 = vadd.f32 1e-05, %v1902_v25 }
 0x930   :  { %2932 = vrsqrt.f32 %v1907_v36 }
 0x931   :  { %2934 = vrsqrt.f32 %v1906_v3 }
 0x932   :  { %v2929_v33 = vpop.eup %2928 }
 0x933   :  { %v2931_v46 = vpop.eup %2930  ;;  %v1913_v21 = vmul.f32 %v2929_v33, %v3959_v37 }
 0x934   :  { %v1912_v35 = vmul.f32 %v2931_v46, %v3962_v12  ;;  %v2045_v12 = vld [vmem:[%s4083_s7 + $0x70] sm:$0xff] }
 0x935   :  { %v1923_v31 = vmul.f32 %v2253_v44, %v1913_v21  ;;  %v2772_v29 = vpack.c.bf16 %v2046_v50, %v2045_v12 }
 0x936   :  { %v1922_v7 = vmul.f32 %v2253_v44, %v1912_v35 }
 0x937   :  { %2773 = vmatprep.subr.bf16.mxu1 %v2772_v29 }
 0x938   :  { %2599 = vmatprep.mubr.msk.f32.mxu0 %vm54_vm0, %v1922_v7  ;;  %2775 = vmatpush3.bf16.msra.mxu1 %v2772_v29 }
 0x939   :  { %2600 = vmatmul.mubr.msk.f32.vlgmr.msra.gmra.mrb[46].mxu0 %vm54_vm0, %v1923_v31 }
 0x93a   :  { %v2933_v0 = vpop.eup %2932 }
 0x93b   :  { %v2935_v45 = vpop.eup %2934  ;;  %v1915_v38 = vmul.f32 %v2933_v0, %v3971_v34 }
 0x93c   :  { %v1914_v40 = vmul.f32 %v2935_v45, %v3974_v23 }
 0x93d   :  { %v1925_v37 = vmul.f32 %v2253_v44, %v1915_v38 }
 0x93e   :  { %v1924_v19 = vmul.f32 %v2253_v44, %v1914_v40 }
 0x940   :  { %2602 = vmatprep.mubr.msk.f32.mxu0 %vm54_vm0, %v1924_v19 }
 0x941   :  { %2603 = vmatmul.mubr.msk.f32.gmra.mrb[48].mxu0 %vm54_vm0, %v1925_v37 }
 0xa0c   :  { %v2601_v34 = vpop.f32.mrb[46].mxu0 }
 0xa0d   :  { %v2008_v49 = vpop.f32.mrb[47].mxu0  ;;  %v2028_v32 = vmax.f32 %v2601_v34, 0.0 }
 0xa0e   :  { %v2027_v23 = vmax.f32 %v2008_v49, 0.0 }
 0xa10   :  { %2637 = vmatprep.mubr.f32.mxu1 %v2027_v23 }
 0xa11   :  { %2638 = vmatmul.mubr.f32.vlgmr.msra.gmra.mrb[60].mxu1 %v2028_v32 }
 0xa14   :  { %v2604_v42 = vpop.f32.mrb[48].mxu0 }
 0xa15   :  { %v2018_v11 = vpop.f32.mrb[49].mxu0  ;;  %v2030_v53 = vmax.f32 %v2604_v42, 0.0 }
 0xa16   :  { %v2029_v30 = vmax.f32 %v2018_v11, 0.0 }
 0xa18   :  { %2640 = vmatprep.mubr.f32.mxu1 %v2029_v30 }
 0xa19   :  { %2641 = vmatmul.mubr.f32.gmra.mrb[62].mxu1 %v2030_v53 }
 0xae4   :  { %v2639_v14 = vpop.f32.mrb[60].mxu1 }
 0xae5   :  { %v2133_v58 = vadd.f32 %v2639_v14, %v3939_v18  ;;  %v2113_v41 = vpop.f32.mrb[61].mxu1 }
 0xae6   :  { %v2132_v26 = vadd.f32 %v2113_v41, %v3942_v43 }
 0xae7   :  { %2137 = vst.msk [vmem:[%s4085_s12 + $0x8] sm:$0xff] %vm54_vm0, %v2133_v58 }
 0xae8   :  { %2136 = vst.msk [vmem:[%s4085_s12] sm:$0xff] %vm54_vm0, %v2132_v26 }
 0xaec   :  { %v2642_v54 = vpop.f32.mrb[62].mxu1 }
 0xaed   :  { %v2135_v55 = vadd.f32 %v2642_v54, %v3949_v27  ;;  %v2123_v62 = vpop.f32.mrb[63].mxu1 }
 0xaee   :  { %v2134_v10 = vadd.f32 %v2123_v62, %v3952_v8 }
 0xaef   :  { %2139 = vst.msk [vmem:[%s4085_s12 + $0x18] sm:$0x3f] %vm64_vm1, %v2135_v55 }
 0xaf0   :  { %2138 = vst.msk [vmem:[%s4085_s12 + $0x10] sm:$0xff] %vm54_vm0, %v2134_v10 }

</bundles_post_ra>
